<compile_context>
chip_gen: v7x
topology: tpu7x:2x2x1
jax: 0.10.0
libtpu: 0.0.40
codegen_flags: <defaults>
</compile_context>

<pallas_src>
import functools

import jax
import jax.numpy as jnp
from jax import lax
from jax.experimental import pallas as pl
from jax.experimental.pallas import tpu as pltpu

K_PROP = 2
ALPHA = 0.1
_MIB = 1024 * 1024


def _round_up(x, m):
    return ((x + m - 1) // m) * m


def _vmem_capacity_bytes():
    """Per-core VMEM capacity; conservative 64 MiB (v7x) if the query fails."""
    try:
        return int(pltpu.get_tpu_info().vmem_capacity_bytes)
    except Exception:
        return 64 * _MIB


def _vmem_limit(footprint_bytes):
    cap = _vmem_capacity_bytes()
    want = max(32 * _MIB, footprint_bytes + max(footprint_bytes // 4, 4 * _MIB))
    return int(min(cap, want))


def _fused_footprint(n_pad, c_pad):
    a = n_pad * n_pad * 2            # A_hat bf16 scratch (single-buffered, manual DMA)
    h = n_pad * c_pad * 2            # h carried across steps (bf16 scratch)
    h0 = 2 * n_pad * c_pad * 4       # h0 input block (assume double-buffered)
    out = 2 * n_pad * c_pad * 4
    return a + h + h0 + out


def _tiled_footprint(n_pad, c_pad, tm, tk):
    a = 3 * tm * tk * 2              # streamed A tiles, Buffered(3)
    h = 2 * n_pad * c_pad * 2        # resident h (bf16), assume 2 buffers
    h0 = 2 * tm * c_pad * 4
    out = 2 * tm * c_pad * 4
    acc = tm * c_pad * 4
    return a + h + h0 + out + acc


def _mlp_footprint(tm, f_pad, h_pad, c_pad):
    return (2 * tm * f_pad * 4 + 2 * f_pad * h_pad * 4 + 2 * h_pad * c_pad * 4
            + 2 * tm * c_pad * 4 + tm * h_pad * 4 + 64 * 1024)


def _plan(n):
    """(tm, tk, n_pad, fused?) for an n-node graph.

    Tile sizes are chosen for DMA efficiency (>=512 on the streamed axis for
    big graphs); the MXU is not the binding resource here.  `fused` is True
    when the whole K-step propagation fits VMEM with A_hat resident.
    """
    if n >= 8192:
        tm, tk = 512, 2048
    elif n >= 2048:
        tm, tk = 512, 1024
    elif n >= 512:
        tm, tk = 256, 512
    else:
        tm, tk = 128, 128            # tiny graphs: minimum (8,128)-aligned tiles
    n_pad = _round_up(n, tk)         # tk is a multiple of tm in every branch
    # c_pad assumed 128 for the residency decision (A dominates the footprint).
    fused = _fused_footprint(n_pad, 128) * 4 <= _vmem_capacity_bytes() * 3
    return tm, tk, n_pad, fused


def _mlp_row_tile(n_pad, f_pad):
    for tm in (1024, 512, 256, 128):
        if n_pad % tm == 0 and 2 * tm * f_pad * 4 <= 16 * _MIB:
            return tm
    return 128


# ---------------------------------------------------------------------------
# Kernel 1: the (tiny) MLP  h0 = relu(X W1 + b1) W2 + b2, tiled over node rows.
# Dropout from the PyTorch module is identity in eval mode.
# ---------------------------------------------------------------------------
def _mlp_kernel(x_ref, w1_ref, b1_ref, w2_ref, b2_ref, out_ref):
    h = jnp.dot(x_ref[...], w1_ref[...], preferred_element_type=jnp.float32)
    h = jnp.maximum(h + b1_ref[...], 0.0)
    out_ref[...] = (
        jnp.dot(h, w2_ref[...], preferred_element_type=jnp.float32) + b2_ref[...]
    )


def _mlp(xp, w1p, b1p, w2p, b2p, *, tm):
    n_pad, f_pad = xp.shape
    h_pad = w1p.shape[1]
    c_pad = w2p.shape[1]
    return pl.pallas_call(
        _mlp_kernel,
        out_shape=jax.ShapeDtypeStruct((n_pad, c_pad), jnp.float32),
        grid_spec=pltpu.PrefetchScalarGridSpec(
            num_scalar_prefetch=0,
            grid=(n_pad // tm,),
            in_specs=[
                pl.BlockSpec((tm, f_pad), lambda i: (i, 0)),     # X row tile
                pl.BlockSpec((f_pad, h_pad), lambda i: (0, 0)),  # W1 (resident)
                pl.BlockSpec((1, h_pad), lambda i: (0, 0)),      # b1
                pl.BlockSpec((h_pad, c_pad), lambda i: (0, 0)),  # W2 (resident)
                pl.BlockSpec((1, c_pad), lambda i: (0, 0)),      # b2
            ],
            out_specs=pl.BlockSpec((tm, c_pad), lambda i: (i, 0)),
        ),
        compiler_params=pltpu.CompilerParams(
            dimension_semantics=("parallel",),
            vmem_limit_bytes=_vmem_limit(_mlp_footprint(tm, f_pad, h_pad, c_pad)),
        ),
    )(xp, w1p, b1p, w2p, b2p)


# ---------------------------------------------------------------------------
# Shared finalize: masked log_softmax over the real classes (padded lanes -inf)
# ---------------------------------------------------------------------------
def _masked_log_softmax(h_f32, nclass):
    lane = lax.broadcasted_iota(jnp.int32, h_f32.shape, 1)
    hm = jnp.where(lane < nclass, h_f32, -jnp.inf)
    z = hm - jnp.max(hm, axis=1, keepdims=True)
    lse = jnp.log(jnp.sum(jnp.exp(z), axis=1, keepdims=True))
    return z - lse


# ---------------------------------------------------------------------------
# Kernel 2a (small/medium graphs): all K propagation steps fused in ONE call.
#   A_hat is DMA'd once into a single-buffered VMEM scratch; h (bf16) is
#   carried in VMEM across steps; log_softmax fused at the end.
# ---------------------------------------------------------------------------
def _make_fused_kernel(*, k_prop, nclass, alpha):
    def kernel(a_hbm_ref, h0_ref, out_ref, a_vmem, h_vmem, dma_sem):
        cp = pltpu.make_async_copy(a_hbm_ref, a_vmem, dma_sem)
        cp.start()
        h_vmem[...] = h0_ref[...].astype(jnp.bfloat16)   # overlaps with the A DMA
        cp.wait()
        for step in range(k_prop):                       # K is a static constant
            ah = jnp.dot(a_vmem[...], h_vmem[...],
                         preferred_element_type=jnp.float32)
            h_new = (1.0 - alpha) * ah + alpha * h0_ref[...]
            if step < k_prop - 1:
                h_vmem[...] = h_new.astype(jnp.bfloat16)
            else:
                out_ref[...] = _masked_log_softmax(h_new, nclass)
    return kernel


def _propagate_fused(a_pad_bf16, h0, *, k_prop, nclass, alpha):
    n_pad, c_pad = h0.shape
    cost = pl.CostEstimate(
        flops=2 * k_prop * n_pad * n_pad * c_pad,
        transcendentals=n_pad * c_pad,
        bytes_accessed=int(a_pad_bf16.size * 2 + 2 * h0.size * 4),
    )
    return pl.pallas_call(
        _make_fused_kernel(k_prop=k_prop, nclass=nclass, alpha=alpha),
        out_shape=jax.ShapeDtypeStruct((n_pad, c_pad), jnp.float32),
        grid_spec=pltpu.PrefetchScalarGridSpec(
            num_scalar_prefetch=0,
            grid=(1,),
            in_specs=[
                pl.BlockSpec(memory_space=pl.ANY),                 # A_hat stays in HBM
                pl.BlockSpec((n_pad, c_pad), lambda i: (0, 0)),    # h0 (VMEM resident)
            ],
            out_specs=pl.BlockSpec((n_pad, c_pad), lambda i: (0, 0)),
            scratch_shapes=[
                pltpu.VMEM((n_pad, n_pad), jnp.bfloat16),          # A_hat, single-buffered
                pltpu.VMEM((n_pad, c_pad), jnp.bfloat16),          # h carried across steps
                pltpu.SemaphoreType.DMA(()),
            ],
        ),
        compiler_params=pltpu.CompilerParams(
            dimension_semantics=("arbitrary",),
            vmem_limit_bytes=_vmem_limit(_fused_footprint(n_pad, c_pad)),
        ),
        cost_estimate=cost,
    )(a_pad_bf16, h0)


# ---------------------------------------------------------------------------
# Kernel 2b (large graphs / fallback): one APPNP step per call,
#   out = (1 - alpha) * (A_hat @ h) + alpha * h0
# A_hat streamed as bf16 tiles (triple-buffered), h fully VMEM-resident (bf16)
# and sliced in-kernel, f32 scratch accumulator, log_softmax fused into the
# final step.  Intermediate h between steps is stored in bf16.
# ---------------------------------------------------------------------------
def _a_tile_spec(tm, tk):
    # The kernel is DMA-bound on A; triple-buffer its tiles.  Fall back
    # silently if this JAX build's BlockSpec lacks pipeline_mode / Buffered.
    try:
        return pl.BlockSpec((tm, tk), lambda i, j: (i, j),
                            pipeline_mode=pl.Buffered(3))
    except Exception:
        return pl.BlockSpec((tm, tk), lambda i, j: (i, j))


def _make_prop_step_kernel(*, final, nclass, alpha, tk):
    def kernel(a_ref, h_ref, h0_ref, out_ref, acc_ref):
        j = pl.program_id(1)

        @pl.when(j == 0)
        def _():
            acc_ref[...] = jnp.zeros_like(acc_ref)

        start = pl.multiple_of(j * tk, tk)
        acc_ref[...] += jnp.dot(
            a_ref[...],                     # (tm, tk) bf16 A_hat tile
            h_ref[pl.ds(start, tk), :],     # (tk, c_pad) slice of VMEM-resident bf16 h
            preferred_element_type=jnp.float32,
        )

        @pl.when(j == pl.num_programs(1) - 1)
        def _():
            h_new = (1.0 - alpha) * acc_ref[...] + alpha * h0_ref[...]
            if final:
                out_ref[...] = _masked_log_softmax(h_new, nclass)
            else:
                out_ref[...] = h_new.astype(out_ref.dtype)   # bf16 intermediate h

    return kernel


def _propagate_step(a_pad_bf16, h_bf16, h0, *, final, nclass, tm, tk, alpha):
    n_pad, c_pad = h0.shape
    grid = (n_pad // tm, n_pad // tk)
    out_dtype = jnp.float32 if final else jnp.bfloat16
    cost = pl.CostEstimate(
        flops=2 * n_pad * n_pad * c_pad,
        transcendentals=n_pad * c_pad if final else 0,
        bytes_accessed=int(a_pad_bf16.size * 2 + h_bf16.size * 2 + h0.size * 4
                           + n_pad * c_pad * (4 if final else 2)),
    )
    return pl.pallas_call(
        _make_prop_step_kernel(final=final, nclass=nclass, alpha=alpha, tk=tk),
        out_shape=jax.ShapeDtypeStruct((n_pad, c_pad), out_dtype),
        grid_spec=pltpu.PrefetchScalarGridSpec(
            num_scalar_prefetch=0,
            grid=grid,
            in_specs=[
                _a_tile_spec(tm, tk),                             # A_hat (bf16 stream)
                pl.BlockSpec((n_pad, c_pad), lambda i, j: (0, 0)),  # h resident (bf16)
                pl.BlockSpec((tm, c_pad), lambda i, j: (i, 0)),     # h0 (f32)
            ],
            out_specs=pl.BlockSpec((tm, c_pad), lambda i, j: (i, 0)),
            scratch_shapes=[pltpu.VMEM((tm, c_pad), jnp.float32)],
        ),
        compiler_params=pltpu.CompilerParams(
            dimension_semantics=("parallel", "arbitrary"),
            vmem_limit_bytes=_vmem_limit(_tiled_footprint(n_pad, c_pad, tm, tk)),
        ),
        cost_estimate=cost,
    )(a_pad_bf16, h_bf16, h0)


# ---------------------------------------------------------------------------
# Setup (hoisted out of the jitted per-forward path; cacheable across calls).
# ---------------------------------------------------------------------------
def pad_a_hat_bf16(a_hat):
    """Pad A_hat to the tile-aligned size and cast to bf16 — do this ONCE."""
    n = a_hat.shape[0]
    _, _, n_pad, _ = _plan(n)
    return (jnp.zeros((n_pad, n_pad), jnp.bfloat16)
            .at[:n, :n].set(a_hat.astype(jnp.bfloat16)))


# ---------------------------------------------------------------------------
# Wrapper: pad to MXU/lane-aligned shapes, run MLP + propagation.
# ---------------------------------------------------------------------------
def appnp_forward(x, a_pad_bf16, w1, b1, w2, b2, *, force_tiled=False):
    n, nfeat = x.shape
    nhid = w1.shape[1]
    nclass = w2.shape[1]

    tm, tk, n_pad, fused = _plan(n)
    if force_tiled:
        fused = False
    assert a_pad_bf16.shape == (n_pad, n_pad) and a_pad_bf16.dtype == jnp.bfloat16, (
        "a_pad_bf16 must come from pad_a_hat_bf16() for this node count")

    f_pad = _round_up(nfeat, 128)
    h_pad = _round_up(nhid, 128)
    c_pad = _round_up(nclass, 128)   # lane-dense class axis (128-wide stores)

    # Zero padding is exact: padded feature/hidden/class lanes stay identically
    # zero, and padded rows never contaminate real rows because the padded
    # columns of A_hat are zero.
    xp = jnp.zeros((n_pad, f_pad), jnp.float32).at[:n, :nfeat].set(x)
    w1p = jnp.zeros((f_pad, h_pad), jnp.float32).at[:nfeat, :nhid].set(w1)
    b1p = jnp.zeros((1, h_pad), jnp.float32).at[0, :nhid].set(b1)
    w2p = jnp.zeros((h_pad, c_pad), jnp.float32).at[:nhid, :nclass].set(w2)
    b2p = jnp.zeros((1, c_pad), jnp.float32).at[0, :nclass].set(b2)

    h0 = _mlp(xp, w1p, b1p, w2p, b2p, tm=_mlp_row_tile(n_pad, f_pad))

    if fused:
        out = _propagate_fused(a_pad_bf16, h0,
                               k_prop=K_PROP, nclass=nclass, alpha=ALPHA)
    else:
        h = h0.astype(jnp.bfloat16)          # intermediate h lives in bf16
        for step in range(K_PROP):
            h = _propagate_step(
                a_pad_bf16, h, h0,
                final=(step == K_PROP - 1),
                nclass=nclass, tm=tm, tk=tk, alpha=ALPHA,
            )
        out = h
    return out[:n, :nclass]


# ---------------------------------------------------------------------------
# Plain-JAX glue + references.
# ---------------------------------------------------------------------------
def gcn_norm_dense(edge_index, num_nodes):
    """Dense D^{-1/2}(A+I)D^{-1/2} from edge_index [2, E] (plain-JAX glue).

    Duplicate edges are summed (matching PyG's scatter-based gcn_norm).  Note
    PyG's add_remaining_self_loops only adds self loops to nodes lacking one,
    whereas this adds +I unconditionally (identical for simple graphs).
    """
    src, dst = edge_index[0], edge_index[1]
    a = jnp.zeros((num_nodes, num_nodes), jnp.float32)
    a = a.at[src, dst].add(1.0)
    a = a + jnp.eye(num_nodes, dtype=jnp.float32)
    deg = jnp.sum(a, axis=1)
    d_inv_sqrt = jnp.where(deg > 0, 1.0 / jnp.sqrt(deg), 0.0)
    return d_inv_sqrt[:, None] * a * d_inv_sqrt[None, :]


def appnp_reference_f32(x, a_hat, w1, b1, w2, b2):
    h = jnp.maximum(x @ w1 + b1, 0.0)
    h = h @ w2 + b2
    h0 = h
    for _ in range(K_PROP):
        h = (1.0 - ALPHA) * (a_hat @ h) + ALPHA * h0
    return jax.nn.log_softmax(h, axis=1)


def appnp_reference_bf16(x, a_hat, w1, b1, w2, b2):
    """Mirrors the kernel numerics: A_hat / h fed to the MXU as bf16, f32 acc,
    f32 blend with h0 (identical for both the fused and the tiled path)."""
    h = jnp.maximum(x @ w1 + b1, 0.0)
    h = h @ w2 + b2
    h0 = h
    a_bf = a_hat.astype(jnp.bfloat16)
    for _ in range(K_PROP):
        ah = jnp.dot(a_bf, h.astype(jnp.bfloat16),
                     preferred_element_type=jnp.float32)
        h = (1.0 - ALPHA) * ah + ALPHA * h0
    return jax.nn.log_softmax(h, axis=1)


if __name__ == "__main__":
    # Small graph consistent with the module: N nodes, nfeat -> nhid -> nclass.
    # Non-aligned sizes on purpose to exercise the padding paths.
    N, NFEAT, NHID, NCLASS, E = 200, 48, 32, 7, 400

    key = jax.random.PRNGKey(0)
    kx, ke, kw1, kb1, kw2, kb2 = jax.random.split(key, 6)

    x = jax.random.normal(kx, (N, NFEAT), jnp.float32)

    # Deterministic random undirected edge_index [2, 2*E]
    src = jax.random.randint(ke, (E,), 0, N)
    dst = jax.random.randint(jax.random.fold_in(ke, 1), (E,), 0, N)
    edge_index = jnp.concatenate(
        [jnp.stack([src, dst]), jnp.stack([dst, src])], axis=1
    )
    a_hat = gcn_norm_dense(edge_index, N)

    # torch.nn.Linear-style deterministic init: U(-1/sqrt(fan_in), 1/sqrt(fan_in))
    bound1 = 1.0 / jnp.sqrt(jnp.float32(NFEAT))
    bound2 = 1.0 / jnp.sqrt(jnp.float32(NHID))
    w1 = jax.random.uniform(kw1, (NFEAT, NHID), jnp.float32, -bound1, bound1)
    b1 = jax.random.uniform(kb1, (NHID,), jnp.float32, -bound1, bound1)
    w2 = jax.random.uniform(kw2, (NHID, NCLASS), jnp.float32, -bound2, bound2)
    b2 = jax.random.uniform(kb2, (NCLASS,), jnp.float32, -bound2, bound2)

    # A_hat padding / bf16 cast hoisted out of the jitted forward (done once,
    # reused across every forward call on the same graph).
    a_pad = jax.block_until_ready(pad_a_hat_bf16(a_hat))

    fwd_auto = jax.jit(appnp_forward)                                  # fused path
    fwd_tiled = jax.jit(functools.partial(appnp_forward, force_tiled=True))

    out_fused = jax.block_until_ready(fwd_auto(x, a_pad, w1, b1, w2, b2))
    out_tiled = jax.block_until_ready(fwd_tiled(x, a_pad, w1, b1, w2, b2))

    ref_bf16 = appnp_reference_bf16(x, a_hat, w1, b1, w2, b2)
    ref_f32 = appnp_reference_f32(x, a_hat, w1, b1, w2, b2)

    for name, out in (("fused", out_fused), ("tiled", out_tiled)):
        assert out.shape == (N, NCLASS), f"{name}: bad shape {out.shape}"
        assert bool(jnp.all(jnp.isfinite(out))), f"{name}: non-finite output"
        # Tight check against a reference that mirrors the kernel's bf16 stream.
        assert jnp.allclose(out, ref_bf16, atol=2e-2, rtol=2e-2), \
            f"{name}: mismatch vs bf16-mirror reference"
        # Looser check against the pure-f32 reference (A_hat streamed in bf16).
        assert jnp.allclose(out, ref_f32, atol=6e-2, rtol=6e-2), \
            f"{name}: mismatch vs f32 reference"
    # The two kernel paths implement identical numerics.
    assert jnp.allclose(out_fused, out_tiled, atol=1e-3, rtol=1e-3), \
        "fused vs tiled path mismatch"

    print("KERNEL_OK")
</pallas_src>

<mosaic_0001>
module attributes {stable_mosaic.version = 11 : i64} {
  func.func @_mlp_kernel(%arg0: i32, %arg1: memref<256x128xf32, #tpu.memory_space<vmem>>, %arg2: memref<128x128xf32, #tpu.memory_space<vmem>>, %arg3: memref<1x128xf32, #tpu.memory_space<vmem>>, %arg4: memref<128x128xf32, #tpu.memory_space<vmem>>, %arg5: memref<1x128xf32, #tpu.memory_space<vmem>>, %arg6: memref<256x128xf32, #tpu.memory_space<vmem>>) attributes {dimension_semantics = [#tpu.dimension_semantics<parallel>], iteration_bounds = array<i64: 1>, scalar_prefetch = 0 : i64, scratch_operands = 0 : i64, tpu.core_type = #tpu.core_type<tc>, window_params = [{transform_indices = @transform_0, window_bounds = array<i64: 256, 128>}, {pipeline_mode = #tpu.pipeline_mode<synchronous>, transform_indices = @transform_1, window_bounds = array<i64: 128, 128>}, {pipeline_mode = #tpu.pipeline_mode<synchronous>, transform_indices = @transform_2, window_bounds = array<i64: 1, 128>}, {pipeline_mode = #tpu.pipeline_mode<synchronous>, transform_indices = @transform_3, window_bounds = array<i64: 128, 128>}, {pipeline_mode = #tpu.pipeline_mode<synchronous>, transform_indices = @transform_4, window_bounds = array<i64: 1, 128>}, {transform_indices = @transform_5, window_bounds = array<i64: 256, 128>}]} {
    %c0 = arith.constant 0 : index
    %c0_0 = arith.constant 0 : index
    %0 = vector.load %arg1[%c0, %c0_0] : memref<256x128xf32, #tpu.memory_space<vmem>>, vector<256x128xf32>
    %c0_1 = arith.constant 0 : index
    %c0_2 = arith.constant 0 : index
    %1 = vector.load %arg2[%c0_1, %c0_2] : memref<128x128xf32, #tpu.memory_space<vmem>>, vector<128x128xf32>
    %cst = arith.constant dense<0.000000e+00> : vector<256x128xf32>
    %2 = tpu.matmul %0, %1, %cst {dimension_numbers = #tpu.dot_dimension_numbers<[1], [0], [0], [1], [0, 0, 1, 1], [], []>} : vector<256x128xf32>, vector<128x128xf32>, vector<256x128xf32> -> vector<256x128xf32>
    %c0_3 = arith.constant 0 : index
    %c0_4 = arith.constant 0 : index
    %3 = vector.load %arg3[%c0_3, %c0_4] : memref<1x128xf32, #tpu.memory_space<vmem>>, vector<1x128xf32>
    %4 = vector.broadcast %3 : vector<1x128xf32> to vector<256x128xf32>
    %5 = arith.addf %2, %4 : vector<256x128xf32>
    %cst_5 = arith.constant 0.000000e+00 : f32
    %6 = vector.broadcast %cst_5 : f32 to vector<256x128xf32>
    %7 = arith.maximumf %5, %6 : vector<256x128xf32>
    %c0_6 = arith.constant 0 : index
    %c0_7 = arith.constant 0 : index
    %8 = vector.load %arg4[%c0_6, %c0_7] : memref<128x128xf32, #tpu.memory_space<vmem>>, vector<128x128xf32>
    %cst_8 = arith.constant dense<0.000000e+00> : vector<256x128xf32>
    %9 = tpu.matmul %7, %8, %cst_8 {dimension_numbers = #tpu.dot_dimension_numbers<[1], [0], [0], [1], [0, 0, 1, 1], [], []>} : vector<256x128xf32>, vector<128x128xf32>, vector<256x128xf32> -> vector<256x128xf32>
    %c0_9 = arith.constant 0 : index
    %c0_10 = arith.constant 0 : index
    %10 = vector.load %arg5[%c0_9, %c0_10] : memref<1x128xf32, #tpu.memory_space<vmem>>, vector<1x128xf32>
    %11 = vector.broadcast %10 : vector<1x128xf32> to vector<256x128xf32>
    %12 = arith.addf %9, %11 : vector<256x128xf32>
    %c0_11 = arith.constant 0 : index
    %c0_12 = arith.constant 0 : index
    %13 = vector.load %arg6[%c0_11, %c0_12] : memref<256x128xf32, #tpu.memory_space<vmem>>, vector<256x128xf32>
    tpu.vector_store %arg6[%c0_11, %c0_12], %12 {strides = array<i32>} : memref<256x128xf32, #tpu.memory_space<vmem>>, vector<256x128xf32>,
    return
  }
  func.func @transform_0(%arg0: i32) -> (i32, i32) {
    %c0_i32 = arith.constant 0 : i32
    %c0_i32_0 = arith.constant 0 : i32
    return %arg0, %c0_i32 : i32, i32
  }
  func.func @transform_1(%arg0: i32) -> (i32, i32) {
    %c0_i32 = arith.constant 0 : i32
    %c0_i32_0 = arith.constant 0 : i32
    %c0_i32_1 = arith.constant 0 : i32
    return %c0_i32, %c0_i32_0 : i32, i32
  }
  func.func @transform_2(%arg0: i32) -> (i32, i32) {
    %c0_i32 = arith.constant 0 : i32
    %c0_i32_0 = arith.constant 0 : i32
    %c0_i32_1 = arith.constant 0 : i32
    return %c0_i32, %c0_i32_0 : i32, i32
  }
  func.func @transform_3(%arg0: i32) -> (i32, i32) {
    %c0_i32 = arith.constant 0 : i32
    %c0_i32_0 = arith.constant 0 : i32
    %c0_i32_1 = arith.constant 0 : i32
    return %c0_i32, %c0_i32_0 : i32, i32
  }
  func.func @transform_4(%arg0: i32) -> (i32, i32) {
    %c0_i32 = arith.constant 0 : i32
    %c0_i32_0 = arith.constant 0 : i32
    %c0_i32_1 = arith.constant 0 : i32
    return %c0_i32, %c0_i32_0 : i32, i32
  }
  func.func @transform_5(%arg0: i32) -> (i32, i32) {
    %c0_i32 = arith.constant 0 : i32
    %c0_i32_0 = arith.constant 0 : i32
    return %arg0, %c0_i32 : i32, i32
  }
}

module attributes {stable_mosaic.version = 11 : i64} {
  func.func @kernel(%arg0: i32, %arg1: memref<256x256xbf16, #tpu.memory_space<any>>, %arg2: memref<256x128xf32, #tpu.memory_space<vmem>>, %arg3: memref<256x128xf32, #tpu.memory_space<vmem>>, %arg4: memref<256x256xbf16, #tpu.memory_space<vmem>>, %arg5: memref<256x128xbf16, #tpu.memory_space<vmem>>, %arg6: memref<!tpu.dma_semaphore, #tpu.memory_space<semaphore_mem>>) attributes {dimension_semantics = [#tpu.dimension_semantics<arbitrary>], iteration_bounds = array<i64: 1>, scalar_prefetch = 0 : i64, scratch_operands = 3 : i64, tpu.core_type = #tpu.core_type<tc>, window_params = [{}, {pipeline_mode = #tpu.pipeline_mode<synchronous>, transform_indices = @transform_1, window_bounds = array<i64: 256, 128>}, {pipeline_mode = #tpu.pipeline_mode<synchronous>, transform_indices = @transform_2, window_bounds = array<i64: 256, 128>}]} {
    tpu.enqueue_dma source(%arg1 : memref<256x256xbf16, #tpu.memory_space<any>>) target(%arg4 : memref<256x256xbf16, #tpu.memory_space<vmem>>) target_semaphore(%arg6 : memref<!tpu.dma_semaphore, #tpu.memory_space<semaphore_mem>>)
    %c0 = arith.constant 0 : index
    %c0_0 = arith.constant 0 : index
    %0 = vector.load %arg2[%c0, %c0_0] : memref<256x128xf32, #tpu.memory_space<vmem>>, vector<256x128xf32>
    %1 = arith.truncf %0 : vector<256x128xf32> to vector<256x128xbf16>
    %c0_1 = arith.constant 0 : index
    %c0_2 = arith.constant 0 : index
    %2 = vector.load %arg5[%c0_1, %c0_2] : memref<256x128xbf16, #tpu.memory_space<vmem>>, vector<256x128xbf16>
    tpu.vector_store %arg5[%c0_1, %c0_2], %1 {strides = array<i32>} : memref<256x128xbf16, #tpu.memory_space<vmem>>, vector<256x128xbf16>,
    tpu.wait_dma2 semaphore(%arg6 : memref<!tpu.dma_semaphore, #tpu.memory_space<semaphore_mem>>) src(%arg1 : memref<256x256xbf16, #tpu.memory_space<any>>) dst(%arg4 : memref<256x256xbf16, #tpu.memory_space<vmem>>)
    %c0_3 = arith.constant 0 : index
    %c0_4 = arith.constant 0 : index
    %3 = vector.load %arg4[%c0_3, %c0_4] : memref<256x256xbf16, #tpu.memory_space<vmem>>, vector<256x256xbf16>
    %c0_5 = arith.constant 0 : index
    %c0_6 = arith.constant 0 : index
    %4 = vector.load %arg5[%c0_5, %c0_6] : memref<256x128xbf16, #tpu.memory_space<vmem>>, vector<256x128xbf16>
    %cst = arith.constant dense<0.000000e+00> : vector<256x128xf32>
    %5 = tpu.matmul %3, %4, %cst {dimension_numbers = #tpu.dot_dimension_numbers<[1], [0], [0], [1], [0, 0, 1, 1], [], []>} : vector<256x256xbf16>, vector<256x128xbf16>, vector<256x128xf32> -> vector<256x128xf32>
    %cst_7 = arith.constant 0.899999976 : f32
    %6 = vector.broadcast %cst_7 : f32 to vector<256x128xf32>
    %7 = arith.mulf %6, %5 : vector<256x128xf32>
    %c0_8 = arith.constant 0 : index
    %c0_9 = arith.constant 0 : index
    %8 = vector.load %arg2[%c0_8, %c0_9] : memref<256x128xf32, #tpu.memory_space<vmem>>, vector<256x128xf32>
    %cst_10 = arith.constant 1.000000e-01 : f32
    %9 = vector.broadcast %cst_10 : f32 to vector<256x128xf32>
    %10 = arith.mulf %9, %8 : vector<256x128xf32>
    %11 = arith.addf %7, %10 : vector<256x128xf32>
    %12 = arith.truncf %11 : vector<256x128xf32> to vector<256x128xbf16>
    %c0_11 = arith.constant 0 : index
    %c0_12 = arith.constant 0 : index
    %13 = vector.load %arg5[%c0_11, %c0_12] : memref<256x128xbf16, #tpu.memory_space<vmem>>, vector<256x128xbf16>
    tpu.vector_store %arg5[%c0_11, %c0_12], %12 {strides = array<i32>} : memref<256x128xbf16, #tpu.memory_space<vmem>>, vector<256x128xbf16>,
    %c0_13 = arith.constant 0 : index
    %c0_14 = arith.constant 0 : index
    %14 = vector.load %arg4[%c0_13, %c0_14] : memref<256x256xbf16, #tpu.memory_space<vmem>>, vector<256x256xbf16>
    %c0_15 = arith.constant 0 : index
    %c0_16 = arith.constant 0 : index
    %15 = vector.load %arg5[%c0_15, %c0_16] : memref<256x128xbf16, #tpu.memory_space<vmem>>, vector<256x128xbf16>
    %cst_17 = arith.constant dense<0.000000e+00> : vector<256x128xf32>
    %16 = tpu.matmul %14, %15, %cst_17 {dimension_numbers = #tpu.dot_dimension_numbers<[1], [0], [0], [1], [0, 0, 1, 1], [], []>} : vector<256x256xbf16>, vector<256x128xbf16>, vector<256x128xf32> -> vector<256x128xf32>
    %cst_18 = arith.constant 0.899999976 : f32
    %17 = vector.broadcast %cst_18 : f32 to vector<256x128xf32>
    %18 = arith.mulf %17, %16 : vector<256x128xf32>
    %c0_19 = arith.constant 0 : index
    %c0_20 = arith.constant 0 : index
    %19 = vector.load %arg2[%c0_19, %c0_20] : memref<256x128xf32, #tpu.memory_space<vmem>>, vector<256x128xf32>
    %cst_21 = arith.constant 1.000000e-01 : f32
    %20 = vector.broadcast %cst_21 : f32 to vector<256x128xf32>
    %21 = arith.mulf %20, %19 : vector<256x128xf32>
    %22 = arith.addf %18, %21 : vector<256x128xf32>
    %23 = tpu.iota {dimensions = array<i32: 1>} : vector<256x128xi32>
    %c7_i32 = arith.constant 7 : i32
    %24 = vector.broadcast %c7_i32 : i32 to vector<256x128xi32>
    %25 = arith.cmpi slt, %23, %24 : vector<256x128xi32>
    %cst_22 = arith.constant 0xFF800000 : f32
    %26 = vector.broadcast %cst_22 : f32 to vector<256x128xf32>
    %27 = arith.select %25, %22, %26 : vector<256x128xi1>, vector<256x128xf32>
    %cst_23 = arith.constant dense<0xFF800000> : vector<256xf32>
    %28 = vector.multi_reduction <maximumf>, %27, %cst_23 [1] : vector<256x128xf32> to vector<256xf32>
    %29 = vector.shape_cast %28 : vector<256xf32> to vector<256x1xf32>
    %30 = vector.broadcast %29 : vector<256x1xf32> to vector<256x128xf32>
    %31 = arith.subf %27, %30 : vector<256x128xf32>
    %32 = math.exp %31 : vector<256x128xf32>
    %cst_24 = arith.constant dense<0.000000e+00> : vector<256xf32>
    %33 = vector.multi_reduction <add>, %32, %cst_24 [1] : vector<256x128xf32> to vector<256xf32>
    %34 = vector.shape_cast %33 : vector<256xf32> to vector<256x1xf32>
    %35 = math.log %34 : vector<256x1xf32>
    %36 = vector.broadcast %35 : vector<256x1xf32> to vector<256x128xf32>
    %37 = arith.subf %31, %36 : vector<256x128xf32>
    %c0_25 = arith.constant 0 : index
    %c0_26 = arith.constant 0 : index
    %38 = vector.load %arg3[%c0_25, %c0_26] : memref<256x128xf32, #tpu.memory_space<vmem>>, vector<256x128xf32>
    tpu.vector_store %arg3[%c0_25, %c0_26], %37 {strides = array<i32>} : memref<256x128xf32, #tpu.memory_space<vmem>>, vector<256x128xf32>,
    return
  }
  func.func @transform_1(%arg0: i32) -> (i32, i32) {
    %c0_i32 = arith.constant 0 : i32
    %c0_i32_0 = arith.constant 0 : i32
    %c0_i32_1 = arith.constant 0 : i32
    return %c0_i32, %c0_i32_0 : i32, i32
  }
  func.func @transform_2(%arg0: i32) -> (i32, i32) {
    %c0_i32 = arith.constant 0 : i32
    %c0_i32_0 = arith.constant 0 : i32
    %c0_i32_1 = arith.constant 0 : i32
    return %c0_i32, %c0_i32_0 : i32, i32
  }
}

</mosaic_0001>

<bundles_post_ra>
// kernel: appnp_forward.2
= control target key start
LH: loop header
LB: loop body
LE: loop exit
PB: predicated region body
PF: predicated region fallthrough
CT: control target
= control target key end

     0   :  { %s1330_s1 = inlined_call_operand.vmem [shape: f32[128,128], index: 1, kind: input, shape index: {}]   ;;  %s1331_s0 = inlined_call_operand.vmem [shape: f32[256,128], index: 0, kind: input, shape index: {}]   ;;  %s1332_s3 = inlined_call_operand.vmem [shape: f32[128,128], index: 3, kind: input, shape index: {}]   ;;  %s1333_s2 = inlined_call_operand.vmem [shape: f32[1,128], index: 2, kind: input, shape index: {}]   ;;  %s1334_s4 = inlined_call_operand.vmem [shape: f32[1,128], index: 4, kind: input, shape index: {}]   ;;  %s1335_s5 = inlined_call_operand.vmem [shape: f32[256,128], index: 5, kind: output, shape index: {}]  }
   0x1   :  { %v52_v0 = vld [vmem:[%s1330_s1] sm:$0xff]  ;;  %v53_v1 = vld [vmem:[%s1330_s1 + $0x8] sm:$0xff]  ;;  %v54_v2 = vld [vmem:[%s1330_s1 + $0x10] sm:$0xff] }
   0x2   :  { %v874_v3 = vpack.c.bf16 %v53_v1, %v52_v0  ;;  %v55_v4 = vld [vmem:[%s1330_s1 + $0x18] sm:$0xff]  ;;  %v56_v6 = vld [vmem:[%s1330_s1 + $0x20] sm:$0xff]  ;;  %v57_v7 = vld [vmem:[%s1330_s1 + $0x28] sm:$0xff] }
   0x3   :  { %v878_v5 = vpack.c.bf16 %v55_v4, %v54_v2  ;;  %v882_v8 = vpack.c.bf16 %v57_v7, %v56_v6  ;;  %v20_v9 = vld [vmem:[%s1331_s0] sm:$0xff]  ;;  %v58_v10 = vld [vmem:[%s1330_s1 + $0x30] sm:$0xff]  ;;  %v59_v11 = vld [vmem:[%s1330_s1 + $0x38] sm:$0xff] }
   0x4   :  { %875 = vmatprep.subr.bf16.mxu0 %v874_v3  ;;  %746 = vmatprep.mubr.f32.mxu0 %v20_v9  ;;  %v886_v12 = vpack.c.bf16 %v59_v11, %v58_v10  ;;  %v60_v13 = vld [vmem:[%s1330_s1 + $0x40] sm:$0xff]  ;;  %v61_v14 = vld [vmem:[%s1330_s1 + $0x48] sm:$0xff]  ;;  %v62_v16 = vld [vmem:[%s1330_s1 + $0x50] sm:$0xff] }
   0x5   :  { %877 = vmatpush3.bf16.msra.mxu0 %v874_v3  ;;  %v890_v15 = vpack.c.bf16 %v61_v14, %v60_v13  ;;  %v63_v17 = vld [vmem:[%s1330_s1 + $0x58] sm:$0xff]  ;;  %v332_v18 = vld [vmem:[%s1332_s3] sm:$0xff]  ;;  %v333_v19 = vld [vmem:[%s1332_s3 + $0x8] sm:$0xff] }
   0x6   :  { %879 = vmatprep.subr.bf16.mxu0 %v878_v5  ;;  %v334_v20 = vld [vmem:[%s1332_s3 + $0x10] sm:$0xff]  ;;  %v894_v21 = vpack.c.bf16 %v63_v17, %v62_v16  ;;  %v64_v22 = vld [vmem:[%s1330_s1 + $0x60] sm:$0xff]  ;;  %v906_v23 = vpack.c.bf16 %v333_v19, %v332_v18  ;;  %v335_v24 = vld [vmem:[%s1332_s3 + $0x18] sm:$0xff] }
   0x7   :  { %v65_v25 = vld [vmem:[%s1330_s1 + $0x68] sm:$0xff]  ;;  %v910_v26 = vpack.c.bf16 %v335_v24, %v334_v20  ;;  %v336_v27 = vld [vmem:[%s1332_s3 + $0x20] sm:$0xff]  ;;  %v66_v30 = vld [vmem:[%s1330_s1 + $0x70] sm:$0xff] }
   0x8   :  { %v337_v28 = vld [vmem:[%s1332_s3 + $0x28] sm:$0xff]  ;;  %907 = vmatprep.subr.bf16.mxu1 %v906_v23  ;;  %v898_v29 = vpack.c.bf16 %v65_v25, %v64_v22  ;;  %v67_v32 = vld [vmem:[%s1330_s1 + $0x78] sm:$0xff]  ;;  %v338_v33 = vld [vmem:[%s1332_s3 + $0x30] sm:$0xff] }
   0x9   :  { %881 = vmatpush3.bf16.msra.mxu0 %v878_v5  ;;  %909 = vmatpush3.bf16.msra.mxu1 %v906_v23  ;;  %v914_v31 = vpack.c.bf16 %v337_v28, %v336_v27  ;;  %v339_v34 = vld [vmem:[%s1332_s3 + $0x38] sm:$0xff]  ;;  %v902_v35 = vpack.c.bf16 %v67_v32, %v66_v30  ;;  %v340_v37 = vld [vmem:[%s1332_s3 + $0x40] sm:$0xff]  ;;  %v341_v38 = vld [vmem:[%s1332_s3 + $0x48] sm:$0xff] }
   0xa   :  { %883 = vmatprep.subr.bf16.mxu0 %v882_v8  ;;  %911 = vmatprep.subr.bf16.mxu1 %v910_v26  ;;  %v918_v36 = vpack.c.bf16 %v339_v34, %v338_v33  ;;  %v922_v39 = vpack.c.bf16 %v341_v38, %v340_v37  ;;  %v342_v40 = vld [vmem:[%s1332_s3 + $0x50] sm:$0xff]  ;;  %v343_v41 = vld [vmem:[%s1332_s3 + $0x58] sm:$0xff]  ;;  %v21_v42 = vld [vmem:[%s1331_s0 + $0x8] sm:$0xff] }
   0xb   :  { %v22_v43 = vld [vmem:[%s1331_s0 + $0x10] sm:$0xff]  ;;  %v926_v44 = vpack.c.bf16 %v343_v41, %v342_v40  ;;  %v344_v45 = vld [vmem:[%s1332_s3 + $0x60] sm:$0xff]  ;;  %v345_v46 = vld [vmem:[%s1332_s3 + $0x68] sm:$0xff] }
   0xc   :  { %v23_v47 = vld [vmem:[%s1331_s0 + $0x18] sm:$0xff]  ;;  %v24_v48 = vld [vmem:[%s1331_s0 + $0x20] sm:$0xff]  ;;  %v930_v49 = vpack.c.bf16 %v345_v46, %v344_v45  ;;  %v25_v50 = vld [vmem:[%s1331_s0 + $0x28] sm:$0xff] }
   0xd   :  { %885 = vmatpush3.bf16.msra.mxu0 %v882_v8  ;;  %913 = vmatpush3.bf16.msra.mxu1 %v910_v26  ;;  %v26_v51 = vld [vmem:[%s1331_s0 + $0x30] sm:$0xff]  ;;  %v27_v52 = vld [vmem:[%s1331_s0 + $0x38] sm:$0xff]  ;;  %v28_v53 = vld [vmem:[%s1331_s0 + $0x40] sm:$0xff] }
   0xe   :  { %887 = vmatprep.subr.bf16.mxu0 %v886_v12  ;;  %915 = vmatprep.subr.bf16.mxu1 %v914_v31  ;;  %v29_v54 = vld [vmem:[%s1331_s0 + $0x48] sm:$0xff]  ;;  %v30_v55 = vld [vmem:[%s1331_s0 + $0x50] sm:$0xff]  ;;  %v31_v56 = vld [vmem:[%s1331_s0 + $0x58] sm:$0xff] }
   0xf   :  { %v32_v57 = vld [vmem:[%s1331_s0 + $0x60] sm:$0xff]  ;;  %v33_v58 = vld [vmem:[%s1331_s0 + $0x68] sm:$0xff]  ;;  %v34_v59 = vld [vmem:[%s1331_s0 + $0x70] sm:$0xff] }
  0x10   :  { %v35_v60 = vld [vmem:[%s1331_s0 + $0x78] sm:$0xff]  ;;  %v36_v61 = vld [vmem:[%s1331_s0 + $0x80] sm:$0xff]  ;;  %v37_v62 = vld [vmem:[%s1331_s0 + $0x88] sm:$0xff] }
  0x11   :  { %889 = vmatpush3.bf16.msra.mxu0 %v886_v12  ;;  %917 = vmatpush3.bf16.msra.mxu1 %v914_v31  ;;  %v38_v63 = vld [vmem:[%s1331_s0 + $0x90] sm:$0xff]  ;;  %v39_v0 = vld [vmem:[%s1331_s0 + $0x98] sm:$0xff]  ;;  %v40_v1 = vld [vmem:[%s1331_s0 + $0xa0] sm:$0xff] }
  0x12   :  { %891 = vmatprep.subr.bf16.mxu0 %v890_v15  ;;  %919 = vmatprep.subr.bf16.mxu1 %v918_v36  ;;  %v41_v2 = vld [vmem:[%s1331_s0 + $0xa8] sm:$0xff]  ;;  %v42_v3 = vld [vmem:[%s1331_s0 + $0xb0] sm:$0xff]  ;;  %v43_v4 = vld [vmem:[%s1331_s0 + $0xb8] sm:$0xff] }
  0x13   :  { %v44_v5 = vld [vmem:[%s1331_s0 + $0xc0] sm:$0xff]  ;;  %v45_v6 = vld [vmem:[%s1331_s0 + $0xc8] sm:$0xff]  ;;  %v46_v7 = vld [vmem:[%s1331_s0 + $0xd0] sm:$0xff] }
  0x14   :  { %v47_v8 = vld [vmem:[%s1331_s0 + $0xd8] sm:$0xff]  ;;  %v48_v9 = vld [vmem:[%s1331_s0 + $0xe0] sm:$0xff]  ;;  %v49_v10 = vld [vmem:[%s1331_s0 + $0xe8] sm:$0xff] }
  0x15   :  { %893 = vmatpush3.bf16.msra.mxu0 %v890_v15  ;;  %921 = vmatpush3.bf16.msra.mxu1 %v918_v36  ;;  %v50_v11 = vld [vmem:[%s1331_s0 + $0xf0] sm:$0xff]  ;;  %v51_v12 = vld [vmem:[%s1331_s0 + $0xf8] sm:$0xff]  ;;  %v1163_v16 = vld [vmem:[%s1333_s2] ss:$0 sm:$0xff] }
  0x16   :  { %895 = vmatprep.subr.bf16.mxu0 %v894_v21  ;;  %923 = vmatprep.subr.bf16.mxu1 %v922_v39  ;;  %v346_v13 = vld [vmem:[%s1332_s3 + $0x70] sm:$0xff]  ;;  %v347_v14 = vld [vmem:[%s1332_s3 + $0x78] sm:$0xff] }
  0x17   :  { %v934_v15 = vpack.c.bf16 %v347_v14, %v346_v13 }
  0x19   :  { %897 = vmatpush3.bf16.msra.mxu0 %v894_v21  ;;  %925 = vmatpush3.bf16.msra.mxu1 %v922_v39 }
  0x1a   :  { %899 = vmatprep.subr.bf16.mxu0 %v898_v29  ;;  %927 = vmatprep.subr.bf16.mxu1 %v926_v44 }
  0x1d   :  { %901 = vmatpush3.bf16.msra.mxu0 %v898_v29  ;;  %929 = vmatpush3.bf16.msra.mxu1 %v926_v44 }
  0x1e   :  { %903 = vmatprep.subr.bf16.mxu0 %v902_v35  ;;  %931 = vmatprep.subr.bf16.mxu1 %v930_v49 }
  0x21   :  { %905 = vmatpush3.bf16.msra.mxu0 %v902_v35  ;;  %933 = vmatpush3.bf16.msra.mxu1 %v930_v49 }
  0x22   :  { %935 = vmatprep.subr.bf16.mxu1 %v934_v15 }
  0x24   :  { %747 = vmatmul.mubr.f32.vlgmr.msra.gmra.mrb[0].mxu0 %v21_v42 }
  0x25   :  { %749 = vmatprep.mubr.f32.mxu0 %v22_v43  ;;  %937 = vmatpush3.bf16.msra.mxu1 %v934_v15 }
  0x28   :  { %750 = vmatmul.mubr.f32.gmra.mrb[2].mxu0 %v23_v47 }
  0x29   :  { %752 = vmatprep.mubr.f32.mxu0 %v24_v48 }
  0x2c   :  { %753 = vmatmul.mubr.f32.gmra.mrb[4].mxu0 %v25_v50 }
  0x2d   :  { %755 = vmatprep.mubr.f32.mxu0 %v26_v51 }
  0x30   :  { %756 = vmatmul.mubr.f32.gmra.mrb[6].mxu0 %v27_v52 }
  0x31   :  { %758 = vmatprep.mubr.f32.mxu0 %v28_v53 }
  0x34   :  { %759 = vmatmul.mubr.f32.gmra.mrb[8].mxu0 %v29_v54 }
  0x35   :  { %761 = vmatprep.mubr.f32.mxu0 %v30_v55 }
  0x38   :  { %762 = vmatmul.mubr.f32.gmra.mrb[10].mxu0 %v31_v56 }
  0x39   :  { %764 = vmatprep.mubr.f32.mxu0 %v32_v57 }
  0x3c   :  { %765 = vmatmul.mubr.f32.gmra.mrb[12].mxu0 %v33_v58 }
  0x3d   :  { %767 = vmatprep.mubr.f32.mxu0 %v34_v59 }
  0x40   :  { %768 = vmatmul.mubr.f32.gmra.mrb[14].mxu0 %v35_v60 }
  0x41   :  { %770 = vmatprep.mubr.f32.mxu0 %v36_v61 }
  0x44   :  { %771 = vmatmul.mubr.f32.gmra.mrb[16].mxu0 %v37_v62 }
  0x45   :  { %773 = vmatprep.mubr.f32.mxu0 %v38_v63 }
  0x48   :  { %774 = vmatmul.mubr.f32.gmra.mrb[18].mxu0 %v39_v0 }
  0x49   :  { %776 = vmatprep.mubr.f32.mxu0 %v40_v1 }
  0x4c   :  { %777 = vmatmul.mubr.f32.gmra.mrb[20].mxu0 %v41_v2 }
  0x4d   :  { %779 = vmatprep.mubr.f32.mxu0 %v42_v3 }
  0x50   :  { %780 = vmatmul.mubr.f32.gmra.mrb[22].mxu0 %v43_v4 }
  0x51   :  { %782 = vmatprep.mubr.f32.mxu0 %v44_v5 }
  0x54   :  { %783 = vmatmul.mubr.f32.gmra.mrb[24].mxu0 %v45_v6 }
  0x55   :  { %785 = vmatprep.mubr.f32.mxu0 %v46_v7 }
  0x58   :  { %786 = vmatmul.mubr.f32.gmra.mrb[26].mxu0 %v47_v8 }
  0x59   :  { %788 = vmatprep.mubr.f32.mxu0 %v48_v9 }
  0x5c   :  { %789 = vmatmul.mubr.f32.gmra.mrb[28].mxu0 %v49_v10 }
  0x5d   :  { %791 = vmatprep.mubr.f32.mxu0 %v50_v11 }
  0x60   :  { %792 = vmatmul.mubr.f32.gmra.mrb[30].mxu0 %v51_v12 }
  0xf7   :  { %v748_v17 = vpop.f32.mrb[0].mxu0 }
  0xf8   :  { %v147_v18 = vadd.f32 %v748_v17, %v1163_v16  ;;  %v141_v19 = vpop.f32.mrb[1].mxu0 }
  0xf9   :  { %v142_v20 = vadd.f32 %v1163_v16, %v141_v19 }
  0xfa   :  { %v301_v23 = vmax.f32 %v147_v18, 0.0 }
  0xfb   :  { %v751_v21 = vpop.f32.mrb[2].mxu0  ;;  %v300_v22 = vmax.f32 %v142_v20, 0.0 }
  0xfc   :  { %v157_v24 = vadd.f32 %v751_v21, %v1163_v16  ;;  %v151_v25 = vpop.f32.mrb[3].mxu0 }
  0xfd   :  { %v152_v26 = vadd.f32 %v1163_v16, %v151_v25  ;;  %826 = vmatprep.mubr.f32.mxu1 %v300_v22 }
  0xfe   :  { %827 = vmatmul.mubr.f32.vlgmr.msra.gmra.mrb[0].mxu1 %v301_v23  ;;  %v303_v29 = vmax.f32 %v157_v24, 0.0 }
  0xff   :  { %v302_v27 = vmax.f32 %v152_v26, 0.0  ;;  %v754_v28 = vpop.f32.mrb[4].mxu0 }
 0x100   :  { %v167_v30 = vadd.f32 %v754_v28, %v1163_v16  ;;  %v161_v31 = vpop.f32.mrb[5].mxu0 }
 0x101   :  { %v162_v32 = vadd.f32 %v1163_v16, %v161_v31  ;;  %829 = vmatprep.mubr.f32.mxu1 %v302_v27 }
 0x102   :  { %830 = vmatmul.mubr.f32.gmra.mrb[2].mxu1 %v303_v29  ;;  %v305_v35 = vmax.f32 %v167_v30, 0.0 }
 0x103   :  { %v304_v33 = vmax.f32 %v162_v32, 0.0  ;;  %v757_v34 = vpop.f32.mrb[6].mxu0 }
 0x104   :  { %v177_v36 = vadd.f32 %v757_v34, %v1163_v16  ;;  %v171_v37 = vpop.f32.mrb[7].mxu0 }
 0x105   :  { %v172_v38 = vadd.f32 %v1163_v16, %v171_v37  ;;  %832 = vmatprep.mubr.f32.mxu1 %v304_v33 }
 0x106   :  { %833 = vmatmul.mubr.f32.gmra.mrb[4].mxu1 %v305_v35  ;;  %v307_v41 = vmax.f32 %v177_v36, 0.0 }
 0x107   :  { %v306_v39 = vmax.f32 %v172_v38, 0.0  ;;  %v760_v40 = vpop.f32.mrb[8].mxu0 }
 0x108   :  { %v187_v42 = vadd.f32 %v760_v40, %v1163_v16  ;;  %v181_v43 = vpop.f32.mrb[9].mxu0 }
 0x109   :  { %v182_v44 = vadd.f32 %v1163_v16, %v181_v43  ;;  %835 = vmatprep.mubr.f32.mxu1 %v306_v39 }
 0x10a   :  { %836 = vmatmul.mubr.f32.gmra.mrb[6].mxu1 %v307_v41  ;;  %v309_v47 = vmax.f32 %v187_v42, 0.0 }
 0x10b   :  { %v308_v45 = vmax.f32 %v182_v44, 0.0  ;;  %v763_v46 = vpop.f32.mrb[10].mxu0 }
 0x10c   :  { %v197_v48 = vadd.f32 %v763_v46, %v1163_v16  ;;  %v191_v49 = vpop.f32.mrb[11].mxu0 }
 0x10d   :  { %v192_v50 = vadd.f32 %v1163_v16, %v191_v49  ;;  %838 = vmatprep.mubr.f32.mxu1 %v308_v45 }
 0x10e   :  { %839 = vmatmul.mubr.f32.gmra.mrb[8].mxu1 %v309_v47  ;;  %v311_v53 = vmax.f32 %v197_v48, 0.0 }
 0x10f   :  { %v310_v51 = vmax.f32 %v192_v50, 0.0  ;;  %v766_v52 = vpop.f32.mrb[12].mxu0  ;;  %v1200_v50 = vld [vmem:[%s1334_s4] ss:$0 sm:$0xff] }
 0x110   :  { %v207_v54 = vadd.f32 %v766_v52, %v1163_v16  ;;  %v201_v55 = vpop.f32.mrb[13].mxu0 }
 0x111   :  { %v202_v56 = vadd.f32 %v1163_v16, %v201_v55  ;;  %841 = vmatprep.mubr.f32.mxu1 %v310_v51 }
 0x112   :  { %842 = vmatmul.mubr.f32.gmra.mrb[10].mxu1 %v311_v53  ;;  %v313_v59 = vmax.f32 %v207_v54, 0.0 }
 0x113   :  { %v312_v57 = vmax.f32 %v202_v56, 0.0  ;;  %v769_v58 = vpop.f32.mrb[14].mxu0 }
 0x114   :  { %v217_v60 = vadd.f32 %v769_v58, %v1163_v16  ;;  %v211_v61 = vpop.f32.mrb[15].mxu0 }
 0x115   :  { %v212_v62 = vadd.f32 %v1163_v16, %v211_v61  ;;  %844 = vmatprep.mubr.f32.mxu1 %v312_v57 }
 0x116   :  { %845 = vmatmul.mubr.f32.gmra.mrb[12].mxu1 %v313_v59  ;;  %v315_v1 = vmax.f32 %v217_v60, 0.0 }
 0x117   :  { %v314_v63 = vmax.f32 %v212_v62, 0.0  ;;  %v772_v0 = vpop.f32.mrb[16].mxu0 }
 0x118   :  { %v227_v2 = vadd.f32 %v772_v0, %v1163_v16  ;;  %v221_v3 = vpop.f32.mrb[17].mxu0 }
 0x119   :  { %v222_v4 = vadd.f32 %v1163_v16, %v221_v3  ;;  %847 = vmatprep.mubr.f32.mxu1 %v314_v63 }
 0x11a   :  { %848 = vmatmul.mubr.f32.gmra.mrb[14].mxu1 %v315_v1  ;;  %v317_v7 = vmax.f32 %v227_v2, 0.0 }
 0x11b   :  { %v316_v5 = vmax.f32 %v222_v4, 0.0  ;;  %v775_v6 = vpop.f32.mrb[18].mxu0 }
 0x11c   :  { %v237_v8 = vadd.f32 %v775_v6, %v1163_v16  ;;  %v231_v9 = vpop.f32.mrb[19].mxu0 }
 0x11d   :  { %v232_v10 = vadd.f32 %v1163_v16, %v231_v9  ;;  %850 = vmatprep.mubr.f32.mxu1 %v316_v5 }
 0x11e   :  { %851 = vmatmul.mubr.f32.gmra.mrb[16].mxu1 %v317_v7  ;;  %v319_v13 = vmax.f32 %v237_v8, 0.0 }
 0x11f   :  { %v318_v11 = vmax.f32 %v232_v10, 0.0  ;;  %v778_v12 = vpop.f32.mrb[20].mxu0 }
 0x120   :  { %v247_v14 = vadd.f32 %v778_v12, %v1163_v16  ;;  %v241_v15 = vpop.f32.mrb[21].mxu0 }
 0x121   :  { %v242_v17 = vadd.f32 %v1163_v16, %v241_v15  ;;  %853 = vmatprep.mubr.f32.mxu1 %v318_v11 }
 0x122   :  { %854 = vmatmul.mubr.f32.gmra.mrb[18].mxu1 %v319_v13  ;;  %v321_v20 = vmax.f32 %v247_v14, 0.0 }
 0x123   :  { %v320_v18 = vmax.f32 %v242_v17, 0.0  ;;  %v781_v19 = vpop.f32.mrb[22].mxu0 }
 0x124   :  { %v257_v21 = vadd.f32 %v781_v19, %v1163_v16  ;;  %v251_v22 = vpop.f32.mrb[23].mxu0 }
 0x125   :  { %v252_v23 = vadd.f32 %v1163_v16, %v251_v22  ;;  %856 = vmatprep.mubr.f32.mxu1 %v320_v18 }
 0x126   :  { %857 = vmatmul.mubr.f32.gmra.mrb[20].mxu1 %v321_v20  ;;  %v323_v26 = vmax.f32 %v257_v21, 0.0 }
 0x127   :  { %v322_v24 = vmax.f32 %v252_v23, 0.0  ;;  %v784_v25 = vpop.f32.mrb[24].mxu0 }
 0x128   :  { %v267_v27 = vadd.f32 %v784_v25, %v1163_v16  ;;  %v261_v28 = vpop.f32.mrb[25].mxu0 }
 0x129   :  { %v262_v29 = vadd.f32 %v1163_v16, %v261_v28  ;;  %859 = vmatprep.mubr.f32.mxu1 %v322_v24 }
 0x12a   :  { %860 = vmatmul.mubr.f32.gmra.mrb[22].mxu1 %v323_v26  ;;  %v325_v32 = vmax.f32 %v267_v27, 0.0 }
 0x12b   :  { %v324_v30 = vmax.f32 %v262_v29, 0.0  ;;  %v787_v31 = vpop.f32.mrb[26].mxu0 }
 0x12c   :  { %v277_v33 = vadd.f32 %v787_v31, %v1163_v16  ;;  %v271_v34 = vpop.f32.mrb[27].mxu0 }
 0x12d   :  { %v272_v35 = vadd.f32 %v1163_v16, %v271_v34  ;;  %862 = vmatprep.mubr.f32.mxu1 %v324_v30 }
 0x12e   :  { %863 = vmatmul.mubr.f32.gmra.mrb[24].mxu1 %v325_v32  ;;  %v327_v38 = vmax.f32 %v277_v33, 0.0 }
 0x12f   :  { %v326_v36 = vmax.f32 %v272_v35, 0.0  ;;  %v790_v37 = vpop.f32.mrb[28].mxu0 }
 0x130   :  { %v287_v39 = vadd.f32 %v790_v37, %v1163_v16  ;;  %v281_v40 = vpop.f32.mrb[29].mxu0 }
 0x131   :  { %v282_v41 = vadd.f32 %v1163_v16, %v281_v40  ;;  %865 = vmatprep.mubr.f32.mxu1 %v326_v36 }
 0x132   :  { %866 = vmatmul.mubr.f32.gmra.mrb[26].mxu1 %v327_v38  ;;  %v329_v44 = vmax.f32 %v287_v39, 0.0 }
 0x133   :  { %v328_v42 = vmax.f32 %v282_v41, 0.0  ;;  %v793_v43 = vpop.f32.mrb[30].mxu0 }
 0x134   :  { %v297_v45 = vadd.f32 %v793_v43, %v1163_v16  ;;  %v291_v46 = vpop.f32.mrb[31].mxu0 }
 0x135   :  { %v292_v47 = vadd.f32 %v1163_v16, %v291_v46  ;;  %868 = vmatprep.mubr.f32.mxu1 %v328_v42 }
 0x136   :  { %869 = vmatmul.mubr.f32.gmra.mrb[28].mxu1 %v329_v44  ;;  %v331_v49 = vmax.f32 %v297_v45, 0.0 }
 0x137   :  { %v330_v48 = vmax.f32 %v292_v47, 0.0 }
 0x139   :  { %871 = vmatprep.mubr.f32.mxu1 %v330_v48 }
 0x13a   :  { %872 = vmatmul.mubr.f32.gmra.mrb[30].mxu1 %v331_v49 }
 0x1d1   :  { %v828_v51 = vpop.f32.mrb[0].mxu1 }
 0x1d2   :  { %v427_v52 = vadd.f32 %v828_v51, %v1200_v50  ;;  %v421_v53 = vpop.f32.mrb[1].mxu1 }
 0x1d3   :  { %v422_v54 = vadd.f32 %v1200_v50, %v421_v53 }
 0x1d4   :  { %581 = vst [vmem:[%s1335_s5 + $0x8] sm:$0xff] %v427_v52 }
 0x1d5   :  { %580 = vst [vmem:[%s1335_s5] sm:$0xff] %v422_v54  ;;  %v831_v16 = vpop.f32.mrb[2].mxu1 }
 0x1d6   :  { %v437_v55 = vadd.f32 %v831_v16, %v1200_v50  ;;  %v431_v56 = vpop.f32.mrb[3].mxu1 }
 0x1d7   :  { %v432_v57 = vadd.f32 %v1200_v50, %v431_v56 }
 0x1d8   :  { %583 = vst [vmem:[%s1335_s5 + $0x18] sm:$0xff] %v437_v55 }
 0x1d9   :  { %582 = vst [vmem:[%s1335_s5 + $0x10] sm:$0xff] %v432_v57  ;;  %v834_v58 = vpop.f32.mrb[4].mxu1 }
 0x1da   :  { %v447_v59 = vadd.f32 %v834_v58, %v1200_v50  ;;  %v441_v60 = vpop.f32.mrb[5].mxu1 }
 0x1db   :  { %v442_v61 = vadd.f32 %v1200_v50, %v441_v60 }
 0x1dc   :  { %585 = vst [vmem:[%s1335_s5 + $0x28] sm:$0xff] %v447_v59 }
 0x1dd   :  { %584 = vst [vmem:[%s1335_s5 + $0x20] sm:$0xff] %v442_v61  ;;  %v837_v62 = vpop.f32.mrb[6].mxu1 }
 0x1de   :  { %v457_v63 = vadd.f32 %v837_v62, %v1200_v50  ;;  %v451_v0 = vpop.f32.mrb[7].mxu1 }
 0x1df   :  { %v452_v1 = vadd.f32 %v1200_v50, %v451_v0 }
 0x1e0   :  { %587 = vst [vmem:[%s1335_s5 + $0x38] sm:$0xff] %v457_v63 }
 0x1e1   :  { %586 = vst [vmem:[%s1335_s5 + $0x30] sm:$0xff] %v452_v1  ;;  %v840_v2 = vpop.f32.mrb[8].mxu1 }
 0x1e2   :  { %v467_v3 = vadd.f32 %v840_v2, %v1200_v50  ;;  %v461_v4 = vpop.f32.mrb[9].mxu1 }
 0x1e3   :  { %v462_v5 = vadd.f32 %v1200_v50, %v461_v4 }
 0x1e4   :  { %589 = vst [vmem:[%s1335_s5 + $0x48] sm:$0xff] %v467_v3 }
 0x1e5   :  { %588 = vst [vmem:[%s1335_s5 + $0x40] sm:$0xff] %v462_v5  ;;  %v843_v6 = vpop.f32.mrb[10].mxu1 }
 0x1e6   :  { %v477_v7 = vadd.f32 %v843_v6, %v1200_v50  ;;  %v471_v8 = vpop.f32.mrb[11].mxu1 }
 0x1e7   :  { %v472_v9 = vadd.f32 %v1200_v50, %v471_v8 }
 0x1e8   :  { %591 = vst [vmem:[%s1335_s5 + $0x58] sm:$0xff] %v477_v7 }
 0x1e9   :  { %590 = vst [vmem:[%s1335_s5 + $0x50] sm:$0xff] %v472_v9  ;;  %v846_v10 = vpop.f32.mrb[12].mxu1 }
 0x1ea   :  { %v487_v11 = vadd.f32 %v846_v10, %v1200_v50  ;;  %v481_v12 = vpop.f32.mrb[13].mxu1 }
 0x1eb   :  { %v482_v13 = vadd.f32 %v1200_v50, %v481_v12 }
 0x1ec   :  { %593 = vst [vmem:[%s1335_s5 + $0x68] sm:$0xff] %v487_v11 }
 0x1ed   :  { %592 = vst [vmem:[%s1335_s5 + $0x60] sm:$0xff] %v482_v13  ;;  %v849_v14 = vpop.f32.mrb[14].mxu1 }
 0x1ee   :  { %v497_v15 = vadd.f32 %v849_v14, %v1200_v50  ;;  %v491_v17 = vpop.f32.mrb[15].mxu1 }
 0x1ef   :  { %v492_v18 = vadd.f32 %v1200_v50, %v491_v17 }
 0x1f0   :  { %595 = vst [vmem:[%s1335_s5 + $0x78] sm:$0xff] %v497_v15 }
 0x1f1   :  { %594 = vst [vmem:[%s1335_s5 + $0x70] sm:$0xff] %v492_v18  ;;  %v852_v19 = vpop.f32.mrb[16].mxu1 }
 0x1f2   :  { %v507_v20 = vadd.f32 %v852_v19, %v1200_v50  ;;  %v501_v21 = vpop.f32.mrb[17].mxu1 }
 0x1f3   :  { %v502_v22 = vadd.f32 %v1200_v50, %v501_v21 }
 0x1f4   :  { %597 = vst [vmem:[%s1335_s5 + $0x88] sm:$0xff] %v507_v20 }
 0x1f5   :  { %596 = vst [vmem:[%s1335_s5 + $0x80] sm:$0xff] %v502_v22  ;;  %v855_v23 = vpop.f32.mrb[18].mxu1 }
 0x1f6   :  { %v517_v24 = vadd.f32 %v855_v23, %v1200_v50  ;;  %v511_v25 = vpop.f32.mrb[19].mxu1 }
 0x1f7   :  { %v512_v26 = vadd.f32 %v1200_v50, %v511_v25 }
 0x1f8   :  { %599 = vst [vmem:[%s1335_s5 + $0x98] sm:$0xff] %v517_v24 }
 0x1f9   :  { %598 = vst [vmem:[%s1335_s5 + $0x90] sm:$0xff] %v512_v26  ;;  %v858_v27 = vpop.f32.mrb[20].mxu1 }
 0x1fa   :  { %v527_v28 = vadd.f32 %v858_v27, %v1200_v50  ;;  %v521_v29 = vpop.f32.mrb[21].mxu1 }
 0x1fb   :  { %v522_v30 = vadd.f32 %v1200_v50, %v521_v29 }
 0x1fc   :  { %601 = vst [vmem:[%s1335_s5 + $0xa8] sm:$0xff] %v527_v28 }
 0x1fd   :  { %600 = vst [vmem:[%s1335_s5 + $0xa0] sm:$0xff] %v522_v30  ;;  %v861_v31 = vpop.f32.mrb[22].mxu1 }
 0x1fe   :  { %v537_v32 = vadd.f32 %v861_v31, %v1200_v50  ;;  %v531_v33 = vpop.f32.mrb[23].mxu1 }
 0x1ff   :  { %v532_v34 = vadd.f32 %v1200_v50, %v531_v33 }
 0x200   :  { %603 = vst [vmem:[%s1335_s5 + $0xb8] sm:$0xff] %v537_v32 }
 0x201   :  { %602 = vst [vmem:[%s1335_s5 + $0xb0] sm:$0xff] %v532_v34  ;;  %v864_v35 = vpop.f32.mrb[24].mxu1 }
 0x202   :  { %v547_v36 = vadd.f32 %v864_v35, %v1200_v50  ;;  %v541_v37 = vpop.f32.mrb[25].mxu1 }
 0x203   :  { %v542_v38 = vadd.f32 %v1200_v50, %v541_v37 }
 0x204   :  { %605 = vst [vmem:[%s1335_s5 + $0xc8] sm:$0xff] %v547_v36 }
 0x205   :  { %604 = vst [vmem:[%s1335_s5 + $0xc0] sm:$0xff] %v542_v38  ;;  %v867_v39 = vpop.f32.mrb[26].mxu1 }
 0x206   :  { %v557_v40 = vadd.f32 %v867_v39, %v1200_v50  ;;  %v551_v41 = vpop.f32.mrb[27].mxu1 }
 0x207   :  { %v552_v42 = vadd.f32 %v1200_v50, %v551_v41 }
 0x208   :  { %607 = vst [vmem:[%s1335_s5 + $0xd8] sm:$0xff] %v557_v40 }
 0x209   :  { %606 = vst [vmem:[%s1335_s5 + $0xd0] sm:$0xff] %v552_v42  ;;  %v870_v43 = vpop.f32.mrb[28].mxu1 }
 0x20a   :  { %v567_v44 = vadd.f32 %v870_v43, %v1200_v50  ;;  %v561_v45 = vpop.f32.mrb[29].mxu1 }
 0x20b   :  { %v562_v46 = vadd.f32 %v1200_v50, %v561_v45 }
 0x20c   :  { %609 = vst [vmem:[%s1335_s5 + $0xe8] sm:$0xff] %v567_v44 }
 0x20d   :  { %608 = vst [vmem:[%s1335_s5 + $0xe0] sm:$0xff] %v562_v46  ;;  %v873_v47 = vpop.f32.mrb[30].mxu1 }
 0x20e   :  { %v577_v48 = vadd.f32 %v873_v47, %v1200_v50  ;;  %v571_v49 = vpop.f32.mrb[31].mxu1 }
 0x20f   :  { %v572_v51 = vadd.f32 %v1200_v50, %v571_v49 }
 0x210   :  { %611 = vst [vmem:[%s1335_s5 + $0xf8] sm:$0xff] %v577_v48 }
 0x211   :  { %610 = vst [vmem:[%s1335_s5 + $0xf0] sm:$0xff] %v572_v51 }

// kernel: appnp_forward.3
= control target key start
LH: loop header
LB: loop body
LE: loop exit
PB: predicated region body
PF: predicated region fallthrough
CT: control target
= control target key end

     0   :  { %s2951_s0 = inlined_call_operand.vmem [shape: bf16[256,256], index: 0, kind: input, shape index: {}]   ;;  %s2952_s1 = inlined_call_operand.vmem [shape: f32[256,128], index: 1, kind: input, shape index: {}]   ;;  %s2953_s2 = inlined_call_operand.vmem [shape: f32[256,128], index: 2, kind: output, shape index: {}]  }
   0x1   :  { %v27_v0 = vld [vmem:[%s2951_s0] sm:$0xf]  ;;  %v29_v1 = vld [vmem:[%s2951_s0 + $0x8] sm:$0xf]  ;;  %v31_v2 = vld [vmem:[%s2951_s0 + $0x4] sm:$0xf] }
   0x2   :  { %28 = vst [vmem:[#allocation2] sm:$0xf] %v27_v0  ;;  %30 = vst [vmem:[#allocation2 + $0x4] sm:$0xf] %v29_v1  ;;  %v33_v3 = vld [vmem:[%s2951_s0 + $0xc] sm:$0xff]   ;;  %v41_v6 = vld [vmem:[%s2951_s0 + $0x1c] sm:$0xff]  }
   0x3   :  { %32 = vst [vmem:[#allocation2 + $0x8] sm:$0xf] %v31_v2  ;;  %v37_v4 = vld [vmem:[%s2951_s0 + $0x18] sm:$0xf]  ;;  %v39_v5 = vld [vmem:[%s2951_s0 + $0x14] sm:$0xf] }
   0x4   :  { %34 = vst [vmem:[#allocation2 + $0xc] sm:$0xff] %v33_v3   ;;  %38 = vst [vmem:[#allocation2 + $0x14] sm:$0xf] %v37_v4  ;;  %v45_v7 = vld [vmem:[%s2951_s0 + $0x28] sm:$0xf]  ;;  %v49_v9 = vld [vmem:[%s2951_s0 + $0x2c] sm:$0xff]  }
   0x5   :  { %40 = vst [vmem:[#allocation2 + $0x18] sm:$0xf] %v39_v5  ;;  %v47_v8 = vld [vmem:[%s2951_s0 + $0x24] sm:$0xf]  ;;  %42 = vst [vmem:[#allocation2 + $0x1c] sm:$0xff] %v41_v6   ;;  %v57_v12 = vld [vmem:[%s2951_s0 + $0x3c] sm:$0xff]  }
   0x6   :  { %46 = vst [vmem:[#allocation2 + $0x24] sm:$0xf] %v45_v7  ;;  %48 = vst [vmem:[#allocation2 + $0x28] sm:$0xf] %v47_v8  ;;  %v53_v10 = vld [vmem:[%s2951_s0 + $0x38] sm:$0xf] }
   0x7   :  { %v55_v11 = vld [vmem:[%s2951_s0 + $0x34] sm:$0xf]  ;;  %50 = vst [vmem:[#allocation2 + $0x2c] sm:$0xff] %v49_v9   ;;  %54 = vst [vmem:[#allocation2 + $0x34] sm:$0xf] %v53_v10  ;;  %v65_v15 = vld [vmem:[%s2951_s0 + $0x4c] sm:$0xff]  }
   0x8   :  { %56 = vst [vmem:[#allocation2 + $0x38] sm:$0xf] %v55_v11  ;;  %v61_v13 = vld [vmem:[%s2951_s0 + $0x48] sm:$0xf]  ;;  %v63_v14 = vld [vmem:[%s2951_s0 + $0x44] sm:$0xf] }
   0x9   :  { %58 = vst [vmem:[#allocation2 + $0x3c] sm:$0xff] %v57_v12   ;;  %62 = vst [vmem:[#allocation2 + $0x44] sm:$0xf] %v61_v13  ;;  %v69_v16 = vld [vmem:[%s2951_s0 + $0x58] sm:$0xf]  ;;  %v73_v18 = vld [vmem:[%s2951_s0 + $0x5c] sm:$0xff]  }
   0xa   :  { %64 = vst [vmem:[#allocation2 + $0x48] sm:$0xf] %v63_v14  ;;  %v71_v17 = vld [vmem:[%s2951_s0 + $0x54] sm:$0xf]  ;;  %66 = vst [vmem:[#allocation2 + $0x4c] sm:$0xff] %v65_v15   ;;  %v81_v21 = vld [vmem:[%s2951_s0 + $0x6c] sm:$0xff]  }
   0xb   :  { %70 = vst [vmem:[#allocation2 + $0x54] sm:$0xf] %v69_v16  ;;  %72 = vst [vmem:[#allocation2 + $0x58] sm:$0xf] %v71_v17  ;;  %v77_v19 = vld [vmem:[%s2951_s0 + $0x68] sm:$0xf] }
   0xc   :  { %v79_v20 = vld [vmem:[%s2951_s0 + $0x64] sm:$0xf]  ;;  %74 = vst [vmem:[#allocation2 + $0x5c] sm:$0xff] %v73_v18   ;;  %78 = vst [vmem:[#allocation2 + $0x64] sm:$0xf] %v77_v19  ;;  %v89_v24 = vld [vmem:[%s2951_s0 + $0x7c] sm:$0xff]  }
   0xd   :  { %80 = vst [vmem:[#allocation2 + $0x68] sm:$0xf] %v79_v20  ;;  %v85_v22 = vld [vmem:[%s2951_s0 + $0x78] sm:$0xf]  ;;  %v87_v23 = vld [vmem:[%s2951_s0 + $0x74] sm:$0xf] }
   0xe   :  { %82 = vst [vmem:[#allocation2 + $0x6c] sm:$0xff] %v81_v21   ;;  %86 = vst [vmem:[#allocation2 + $0x74] sm:$0xf] %v85_v22  ;;  %v93_v25 = vld [vmem:[%s2951_s0 + $0x88] sm:$0xf]  ;;  %v97_v27 = vld [vmem:[%s2951_s0 + $0x8c] sm:$0xff]  }
   0xf   :  { %88 = vst [vmem:[#allocation2 + $0x78] sm:$0xf] %v87_v23  ;;  %v95_v26 = vld [vmem:[%s2951_s0 + $0x84] sm:$0xf]  ;;  %90 = vst [vmem:[#allocation2 + $0x7c] sm:$0xff] %v89_v24   ;;  %v105_v30 = vld [vmem:[%s2951_s0 + $0x9c] sm:$0xff]  }
  0x10   :  { %94 = vst [vmem:[#allocation2 + $0x84] sm:$0xf] %v93_v25  ;;  %96 = vst [vmem:[#allocation2 + $0x88] sm:$0xf] %v95_v26  ;;  %v101_v28 = vld [vmem:[%s2951_s0 + $0x98] sm:$0xf] }
  0x11   :  { %v103_v29 = vld [vmem:[%s2951_s0 + $0x94] sm:$0xf]  ;;  %98 = vst [vmem:[#allocation2 + $0x8c] sm:$0xff] %v97_v27   ;;  %102 = vst [vmem:[#allocation2 + $0x94] sm:$0xf] %v101_v28  ;;  %v113_v33 = vld [vmem:[%s2951_s0 + $0xac] sm:$0xff]  }
  0x12   :  { %104 = vst [vmem:[#allocation2 + $0x98] sm:$0xf] %v103_v29  ;;  %v109_v31 = vld [vmem:[%s2951_s0 + $0xa8] sm:$0xf]  ;;  %v111_v32 = vld [vmem:[%s2951_s0 + $0xa4] sm:$0xf] }
  0x13   :  { %106 = vst [vmem:[#allocation2 + $0x9c] sm:$0xff] %v105_v30   ;;  %110 = vst [vmem:[#allocation2 + $0xa4] sm:$0xf] %v109_v31  ;;  %v117_v34 = vld [vmem:[%s2951_s0 + $0xb8] sm:$0xf]  ;;  %v121_v36 = vld [vmem:[%s2951_s0 + $0xbc] sm:$0xff]  }
  0x14   :  { %112 = vst [vmem:[#allocation2 + $0xa8] sm:$0xf] %v111_v32  ;;  %v119_v35 = vld [vmem:[%s2951_s0 + $0xb4] sm:$0xf]  ;;  %114 = vst [vmem:[#allocation2 + $0xac] sm:$0xff] %v113_v33   ;;  %v129_v39 = vld [vmem:[%s2951_s0 + $0xcc] sm:$0xff]  }
  0x15   :  { %118 = vst [vmem:[#allocation2 + $0xb4] sm:$0xf] %v117_v34  ;;  %120 = vst [vmem:[#allocation2 + $0xb8] sm:$0xf] %v119_v35  ;;  %v125_v37 = vld [vmem:[%s2951_s0 + $0xc8] sm:$0xf] }
  0x16   :  { %v127_v38 = vld [vmem:[%s2951_s0 + $0xc4] sm:$0xf]  ;;  %122 = vst [vmem:[#allocation2 + $0xbc] sm:$0xff] %v121_v36   ;;  %126 = vst [vmem:[#allocation2 + $0xc4] sm:$0xf] %v125_v37  ;;  %v137_v42 = vld [vmem:[%s2951_s0 + $0xdc] sm:$0xff]  }
  0x17   :  { %128 = vst [vmem:[#allocation2 + $0xc8] sm:$0xf] %v127_v38  ;;  %v133_v40 = vld [vmem:[%s2951_s0 + $0xd8] sm:$0xf]  ;;  %v135_v41 = vld [vmem:[%s2951_s0 + $0xd4] sm:$0xf] }
  0x18   :  { %130 = vst [vmem:[#allocation2 + $0xcc] sm:$0xff] %v129_v39   ;;  %134 = vst [vmem:[#allocation2 + $0xd4] sm:$0xf] %v133_v40  ;;  %v141_v43 = vld [vmem:[%s2951_s0 + $0xe8] sm:$0xf]  ;;  %v145_v45 = vld [vmem:[%s2951_s0 + $0xec] sm:$0xff]  }
  0x19   :  { %136 = vst [vmem:[#allocation2 + $0xd8] sm:$0xf] %v135_v41  ;;  %v143_v44 = vld [vmem:[%s2951_s0 + $0xe4] sm:$0xf]  ;;  %138 = vst [vmem:[#allocation2 + $0xdc] sm:$0xff] %v137_v42  }
  0x1a   :  { %142 = vst [vmem:[#allocation2 + $0xe4] sm:$0xf] %v141_v43  ;;  %144 = vst [vmem:[#allocation2 + $0xe8] sm:$0xf] %v143_v44  ;;  %v149_v46 = vld [vmem:[%s2951_s0 + $0xf8] sm:$0xf] }
  0x1b   :  { %v151_v47 = vld [vmem:[%s2951_s0 + $0xf4] sm:$0xf]  ;;  %146 = vst [vmem:[#allocation2 + $0xec] sm:$0xff] %v145_v45   ;;  %150 = vst [vmem:[#allocation2 + $0xf4] sm:$0xf] %v149_v46 }
  0x1c   :  { %152 = vst [vmem:[#allocation2 + $0xf8] sm:$0xf] %v151_v47  ;;  %v153_v48 = vld [vmem:[%s2951_s0 + $0xfc] sm:$0xf] }
  0x1d   :  { %154 = vst [vmem:[#allocation2 + $0xfc] sm:$0xf] %v153_v48 }
  0x1e   :  { %313 = vsyncadd [#allocation4], 4096  ;;  %v314_v49 = vld [vmem:[%s2952_s1] sm:$0xff]  ;;  %v315_v50 = vld [vmem:[%s2952_s1 + $0x8] sm:$0xff] }
  0x1f   :  { %v316_v51 = vld [vmem:[%s2952_s1 + $0x10] sm:$0xff]  ;;  %v317_v52 = vld [vmem:[%s2952_s1 + $0x18] sm:$0xff]  ;;  %v318_v53 = vld [vmem:[%s2952_s1 + $0x20] sm:$0xff]  ;;  %v346_v54 = vpack.c.bf16 %v315_v50, %v314_v49 }
  0x20   :  { %v319_v55 = vld [vmem:[%s2952_s1 + $0x28] sm:$0xff]  ;;  %v320_v56 = vld [vmem:[%s2952_s1 + $0x30] sm:$0xff]  ;;  %v321_v57 = vld [vmem:[%s2952_s1 + $0x38] sm:$0xff]  ;;  %v347_v58 = vpack.c.bf16 %v317_v52, %v316_v51 }
  0x21   :  { %v322_v59 = vld [vmem:[%s2952_s1 + $0x40] sm:$0xff]  ;;  %v323_v60 = vld [vmem:[%s2952_s1 + $0x48] sm:$0xff]  ;;  %v324_v61 = vld [vmem:[%s2952_s1 + $0x50] sm:$0xff]  ;;  %v348_v62 = vpack.c.bf16 %v319_v55, %v318_v53  ;;  %v349_v63 = vpack.c.bf16 %v321_v57, %v320_v56 }
  0x22   :  { %v325_v0 = vld [vmem:[%s2952_s1 + $0x58] sm:$0xff]  ;;  %v326_v1 = vld [vmem:[%s2952_s1 + $0x60] sm:$0xff]  ;;  %v327_v2 = vld [vmem:[%s2952_s1 + $0x68] sm:$0xff]  ;;  %v350_v3 = vpack.c.bf16 %v323_v60, %v322_v59 }
  0x23   :  { %v328_v4 = vld [vmem:[%s2952_s1 + $0x70] sm:$0xff]  ;;  %v329_v5 = vld [vmem:[%s2952_s1 + $0x78] sm:$0xff]  ;;  %v330_v6 = vld [vmem:[%s2952_s1 + $0x80] sm:$0xff]  ;;  %v351_v7 = vpack.c.bf16 %v325_v0, %v324_v61  ;;  %v352_v8 = vpack.c.bf16 %v327_v2, %v326_v1 }
  0x24   :  { %v331_v9 = vld [vmem:[%s2952_s1 + $0x88] sm:$0xff]  ;;  %v332_v10 = vld [vmem:[%s2952_s1 + $0x90] sm:$0xff]  ;;  %v333_v11 = vld [vmem:[%s2952_s1 + $0x98] sm:$0xff]  ;;  %v353_v12 = vpack.c.bf16 %v329_v5, %v328_v4 }
  0x25   :  { %v334_v13 = vld [vmem:[%s2952_s1 + $0xa0] sm:$0xff]  ;;  %v335_v14 = vld [vmem:[%s2952_s1 + $0xa8] sm:$0xff]  ;;  %v336_v15 = vld [vmem:[%s2952_s1 + $0xb0] sm:$0xff]  ;;  %v354_v16 = vpack.c.bf16 %v331_v9, %v330_v6  ;;  %v355_v17 = vpack.c.bf16 %v333_v11, %v332_v10 }
  0x26   :  { %v337_v18 = vld [vmem:[%s2952_s1 + $0xb8] sm:$0xff]  ;;  %v338_v19 = vld [vmem:[%s2952_s1 + $0xc0] sm:$0xff]  ;;  %v339_v20 = vld [vmem:[%s2952_s1 + $0xc8] sm:$0xff]  ;;  %v356_v21 = vpack.c.bf16 %v335_v14, %v334_v13 }
  0x27   :  { %v340_v22 = vld [vmem:[%s2952_s1 + $0xd0] sm:$0xff]  ;;  %v341_v23 = vld [vmem:[%s2952_s1 + $0xd8] sm:$0xff]  ;;  %v342_v24 = vld [vmem:[%s2952_s1 + $0xe0] sm:$0xff]  ;;  %v357_v25 = vpack.c.bf16 %v337_v18, %v336_v15  ;;  %v358_v26 = vpack.c.bf16 %v339_v20, %v338_v19  ;;  %1500 = vmatprep.subr.bf16.mxu0 %v354_v16 }
  0x28   :  { %v343_v27 = vld [vmem:[%s2952_s1 + $0xe8] sm:$0xff]  ;;  %v344_v28 = vld [vmem:[%s2952_s1 + $0xf0] sm:$0xff]  ;;  %v345_v29 = vld [vmem:[%s2952_s1 + $0xf8] sm:$0xff]  ;;  %v359_v30 = vpack.c.bf16 %v341_v23, %v340_v22 }
  0x29   :  { %v360_v31 = vpack.c.bf16 %v343_v27, %v342_v24  ;;  %v361_v32 = vpack.c.bf16 %v345_v29, %v344_v28 }
  0x2a   :  { %1852 = dma.done.wait [#allocation4], 4096 }
  0x2b   :  { %1853 = vsyncadd [#allocation4], 4294963200  ;;  %1501 = vmatpush3.bf16.msra.mxu0 %v346_v54  ;;  %v383_v33 = vld [vmem:[#allocation2 + $0x8] sm:$0xff]  ;;  %v2112_v34 = vld [vmem:[#allocation2] sm:$0xff] }
  0x2c   :  { %1502 = vmatprep.subr.bf16.mxu0 %v355_v17  ;;  %462 = vmatprep.mubr.bf16.mxu0 %v383_v33  ;;  %v2114_v35 = vld [vmem:[#allocation2 + $0x18] sm:$0xff]  ;;  %v2118_v36 = vld [vmem:[#allocation2 + $0x10] sm:$0xff]  ;;  %v2120_v37 = vld [vmem:[#allocation2 + $0x28] sm:$0xff] }
  0x2d   :  { %831 = vmatprep.mubr.bf16.mxu1 %v383_v33  ;;  %v2124_v38 = vld [vmem:[#allocation2 + $0x20] sm:$0xff]  ;;  %v2126_v39 = vld [vmem:[#allocation2 + $0x38] sm:$0xff]  ;;  %v2130_v40 = vld [vmem:[#allocation2 + $0x30] sm:$0xff] }
  0x2e   :  { %v2132_v41 = vld [vmem:[#allocation2 + $0x48] sm:$0xff]  ;;  %v2136_v42 = vld [vmem:[#allocation2 + $0x40] sm:$0xff]  ;;  %v2138_v43 = vld [vmem:[#allocation2 + $0x58] sm:$0xff] }
  0x2f   :  { %1503 = vmatpush3.bf16.msra.mxu0 %v347_v58  ;;  %v2142_v44 = vld [vmem:[#allocation2 + $0x50] sm:$0xff]  ;;  %v2144_v45 = vld [vmem:[#allocation2 + $0x68] sm:$0xff]  ;;  %v2148_v46 = vld [vmem:[#allocation2 + $0x60] sm:$0xff] }
  0x30   :  { %1504 = vmatprep.subr.bf16.mxu0 %v356_v21  ;;  %v2150_v47 = vld [vmem:[#allocation2 + $0x78] sm:$0xff]  ;;  %v2154_v48 = vld [vmem:[#allocation2 + $0x70] sm:$0xff]  ;;  %v2156_v49 = vld [vmem:[#allocation2 + $0x88] sm:$0xff] }
  0x31   :  { %v2160_v50 = vld [vmem:[#allocation2 + $0x80] sm:$0xff]  ;;  %v2162_v51 = vld [vmem:[#allocation2 + $0x98] sm:$0xff]  ;;  %v2166_v52 = vld [vmem:[#allocation2 + $0x90] sm:$0xff] }
  0x32   :  { %v2168_v53 = vld [vmem:[#allocation2 + $0xa8] sm:$0xff]  ;;  %v2172_v54 = vld [vmem:[#allocation2 + $0xa0] sm:$0xff]  ;;  %v2174_v55 = vld [vmem:[#allocation2 + $0xb8] sm:$0xff] }
  0x33   :  { %1505 = vmatpush3.bf16.msra.mxu0 %v348_v62  ;;  %v2178_v56 = vld [vmem:[#allocation2 + $0xb0] sm:$0xff]  ;;  %v2180_v57 = vld [vmem:[#allocation2 + $0xc8] sm:$0xff]  ;;  %v2184_v58 = vld [vmem:[#allocation2 + $0xc0] sm:$0xff] }
  0x34   :  { %1506 = vmatprep.subr.bf16.mxu0 %v357_v25  ;;  %v2186_v59 = vld [vmem:[#allocation2 + $0xd8] sm:$0xff]  ;;  %v2190_v60 = vld [vmem:[#allocation2 + $0xd0] sm:$0xff]  ;;  %v2192_v61 = vld [vmem:[#allocation2 + $0xe8] sm:$0xff] }
  0x35   :  { %v2196_v62 = vld [vmem:[#allocation2 + $0xe0] sm:$0xff]  ;;  %v2202_v0 = vld [vmem:[#allocation2 + $0xf0] sm:$0xff]  ;;  %v624_v4 = vld [vmem:[%s2952_s1 + $0x8] sm:$0xff] }
  0x36   :  { %2973 = vst [vmem:[#allocation7_spill] sm:$0xff] %v2202_v0  ;;  %v2213_v11 = vmul.f32 0.1, %v624_v4  ;;  %v625_v17 = vld [vmem:[%s2952_s1 + $0x10] sm:$0xff]  ;;  %v626_v18 = vld [vmem:[%s2952_s1 + $0x18] sm:$0xff]  ;;  %v628_v33 = vld [vmem:[%s2952_s1 + $0x28] sm:$0xff] }
  0x37   :  { %1507 = vmatpush3.bf16.msra.mxu0 %v349_v63  ;;  %v2198_v63 = vld [vmem:[#allocation2 + $0xf8] sm:$0xff]  ;;  %v2229_v24 = vmul.f32 0.1, %v625_v17 }
  0x38   :  { %1508 = vmatprep.subr.bf16.mxu0 %v358_v26  ;;  %2975 = vst [vmem:[#allocation9_spill] sm:$0xff] %v2213_v11  ;;  %v2231_v26 = vmul.f32 0.1, %v626_v18  ;;  %v629_v18 = vld [vmem:[%s2952_s1 + $0x30] sm:$0xff] }
  0x39   :  { %2976 = vst [vmem:[#allocation10_spill] sm:$0xff] %v2229_v24 }
  0x3a   :  { %2977 = vst [vmem:[#allocation11_spill] sm:$0xff] %v2231_v26 }
  0x3b   :  { %1509 = vmatpush3.bf16.msra.mxu0 %v350_v3  ;;  %v623_v3 = vld [vmem:[%s2952_s1] sm:$0xff] }
  0x3c   :  { %1510 = vmatprep.subr.bf16.mxu0 %v359_v30  ;;  %v2211_v9 = vmul.f32 0.1, %v623_v3 }
  0x3e   :  { %2974 = vst [vmem:[#allocation8_spill] sm:$0xff] %v2211_v9 }
  0x3f   :  { %1511 = vmatpush3.bf16.msra.mxu0 %v351_v7 }
  0x40   :  { %1512 = vmatprep.subr.bf16.mxu0 %v360_v31 }
  0x43   :  { %1513 = vmatpush3.bf16.msra.mxu0 %v352_v8 }
  0x44   :  { %1514 = vmatprep.subr.bf16.mxu0 %v361_v32  ;;  %v627_v32 = vld [vmem:[%s2952_s1 + $0x20] sm:$0xff] }
  0x47   :  { %1515 = vmatpush3.bf16.msra.mxu0 %v353_v12 }
  0x4a   :  { %463 = vmatmul.mubr.bf16.vlgmr.msra.gmra.mrb[0].mxu0 %v2112_v34 }
  0x4b   :  { %470 = vmatprep.mubr.bf16.mxu0 %v2114_v35 }
  0x52   :  { %471 = vmatmul.mubr.bf16.gmra.mrb[4].mxu0 %v2118_v36 }
  0x53   :  { %478 = vmatprep.mubr.bf16.mxu0 %v2120_v37 }
  0x5a   :  { %479 = vmatmul.mubr.bf16.gmra.mrb[8].mxu0 %v2124_v38 }
  0x5b   :  { %486 = vmatprep.mubr.bf16.mxu0 %v2126_v39 }
  0x62   :  { %487 = vmatmul.mubr.bf16.gmra.mrb[12].mxu0 %v2130_v40 }
  0x63   :  { %494 = vmatprep.mubr.bf16.mxu0 %v2132_v41 }
  0x6a   :  { %495 = vmatmul.mubr.bf16.gmra.mrb[16].mxu0 %v2136_v42 }
  0x6b   :  { %502 = vmatprep.mubr.bf16.mxu0 %v2138_v43 }
  0x72   :  { %503 = vmatmul.mubr.bf16.gmra.mrb[20].mxu0 %v2142_v44 }
  0x73   :  { %510 = vmatprep.mubr.bf16.mxu0 %v2144_v45 }
  0x7a   :  { %511 = vmatmul.mubr.bf16.gmra.mrb[24].mxu0 %v2148_v46 }
  0x7b   :  { %518 = vmatprep.mubr.bf16.mxu0 %v2150_v47 }
  0x82   :  { %519 = vmatmul.mubr.bf16.gmra.mrb[28].mxu0 %v2154_v48 }
  0x83   :  { %526 = vmatprep.mubr.bf16.mxu0 %v2156_v49 }
  0x8a   :  { %527 = vmatmul.mubr.bf16.gmra.mrb[32].mxu0 %v2160_v50 }
  0x8b   :  { %534 = vmatprep.mubr.bf16.mxu0 %v2162_v51 }
  0x92   :  { %535 = vmatmul.mubr.bf16.gmra.mrb[36].mxu0 %v2166_v52 }
  0x93   :  { %542 = vmatprep.mubr.bf16.mxu0 %v2168_v53 }
  0x9a   :  { %543 = vmatmul.mubr.bf16.gmra.mrb[40].mxu0 %v2172_v54 }
  0x9b   :  { %550 = vmatprep.mubr.bf16.mxu0 %v2174_v55 }
  0xa2   :  { %551 = vmatmul.mubr.bf16.gmra.mrb[44].mxu0 %v2178_v56 }
  0xa3   :  { %558 = vmatprep.mubr.bf16.mxu0 %v2180_v57 }
  0xaa   :  { %559 = vmatmul.mubr.bf16.gmra.mrb[48].mxu0 %v2184_v58 }
  0xab   :  { %566 = vmatprep.mubr.bf16.mxu0 %v2186_v59 }
  0xb2   :  { %567 = vmatmul.mubr.bf16.gmra.mrb[52].mxu0 %v2190_v60 }
  0xb3   :  { %574 = vmatprep.mubr.bf16.mxu0 %v2192_v61 }
  0xba   :  { %575 = vmatmul.mubr.bf16.gmra.mrb[56].mxu0 %v2196_v62 }
  0xbb   :  { %582 = vmatprep.mubr.bf16.mxu0 %v2198_v63 }
  0xc2   :  { %583 = vmatmul.mubr.bf16.gmra.mrb[60].mxu0 %v2202_v0 }
 0x11d   :  { %v1516_v1 = vpop.f32.mrb[0].mxu0 }
 0x11e   :  { %v1517_v2 = vpop.f32.mrb[1].mxu0 }
 0x11f   :  { %v1518_v5 = vadd.f32 %v1517_v2, %v1516_v1  ;;  %v1519_v6 = vpop.f32.mrb[2].mxu0 }
 0x120   :  { %v1520_v7 = vpop.f32.mrb[3].mxu0 }
 0x121   :  { %v591_v8 = vmul.f32 0.9, %v1518_v5  ;;  %v1521_v10 = vadd.f32 %v1520_v7, %v1519_v6  ;;  %v2247_v6 = vmul.f32 0.1, %v627_v32 }
 0x123   :  { %v592_v12 = vmul.f32 0.9, %v1521_v10  ;;  %v2216_v13 = vadd.f32 %v2211_v9, %v591_v8  ;;  %2978 = vst [vmem:[#allocation12_spill] sm:$0xff] %v2247_v6  ;;  %v2249_v8 = vmul.f32 0.1, %v628_v33 }
 0x125   :  { %v2219_v14 = vadd.f32 %v2213_v11, %v592_v12  ;;  %v1522_v15 = vpop.f32.mrb[4].mxu0  ;;  %2979 = vst [vmem:[#allocation13_spill] sm:$0xff] %v2249_v8 }
 0x126   :  { %v1523_v16 = vpop.f32.mrb[5].mxu0 }
 0x127   :  { %v1524_v19 = vadd.f32 %v1523_v16, %v1522_v15  ;;  %v1525_v20 = vpop.f32.mrb[6].mxu0 }
 0x128   :  { %v1526_v22 = vpop.f32.mrb[7].mxu0 }
 0x129   :  { %v593_v23 = vmul.f32 0.9, %v1524_v19  ;;  %v1527_v25 = vadd.f32 %v1526_v22, %v1525_v20  ;;  %v630_v19 = vld [vmem:[%s2952_s1 + $0x38] sm:$0xff] }
 0x12a   :  { %v2267_v32 = vmul.f32 0.1, %v630_v19 }
 0x12b   :  { %v594_v27 = vmul.f32 0.9, %v1527_v25  ;;  %v2234_v28 = vadd.f32 %v2229_v24, %v593_v23 }
 0x12c   :  { %2981 = vst [vmem:[#allocation15_spill] sm:$0xff] %v2267_v32 }
 0x12d   :  { %v2237_v29 = vadd.f32 %v2231_v26, %v594_v27  ;;  %v1528_v30 = vpop.f32.mrb[8].mxu0 }
 0x12e   :  { %v1529_v31 = vpop.f32.mrb[9].mxu0 }
 0x12f   :  { %v1530_v1 = vadd.f32 %v1529_v31, %v1528_v30  ;;  %v1531_v2 = vpop.f32.mrb[10].mxu0  ;;  %v2265_v30 = vmul.f32 0.1, %v629_v18 }
 0x130   :  { %v1532_v4 = vpop.f32.mrb[11].mxu0 }
 0x131   :  { %v595_v5 = vmul.f32 0.9, %v1530_v1  ;;  %v1533_v7 = vadd.f32 %v1532_v4, %v1531_v2  ;;  %2980 = vst [vmem:[#allocation14_spill] sm:$0xff] %v2265_v30 }
 0x133   :  { %v596_v10 = vmul.f32 0.9, %v1533_v7  ;;  %v2252_v12 = vadd.f32 %v2247_v6, %v595_v5  ;;  %v631_v7 = vld [vmem:[%s2952_s1 + $0x40] sm:$0xff] }
 0x135   :  { %v2255_v15 = vadd.f32 %v2249_v8, %v596_v10  ;;  %v1534_v16 = vpop.f32.mrb[12].mxu0  ;;  %v632_v10 = vld [vmem:[%s2952_s1 + $0x48] sm:$0xff] }
 0x136   :  { %v1535_v17 = vpop.f32.mrb[13].mxu0 }
 0x137   :  { %v1536_v20 = vadd.f32 %v1535_v17, %v1534_v16  ;;  %v1537_v22 = vpop.f32.mrb[14].mxu0 }
 0x138   :  { %v1538_v25 = vpop.f32.mrb[15].mxu0 }
 0x139   :  { %v597_v27 = vmul.f32 0.9, %v1536_v20  ;;  %v1539_v31 = vadd.f32 %v1538_v25, %v1537_v22  ;;  %v2283_v22 = vmul.f32 0.1, %v631_v7  ;;  %v634_v7 = vld [vmem:[%s2952_s1 + $0x58] sm:$0xff] }
 0x13a   :  { %v2303_v18 = vmul.f32 0.1, %v634_v7 }
 0x13b   :  { %v598_v33 = vmul.f32 0.9, %v1539_v31  ;;  %v2270_v1 = vadd.f32 %v2265_v30, %v597_v27  ;;  %2982 = vst [vmem:[#allocation16_spill] sm:$0xff] %v2283_v22  ;;  %v2285_v27 = vmul.f32 0.1, %v632_v10 }
 0x13c   :  { %2985 = vst [vmem:[#allocation19_spill] sm:$0xff] %v2303_v18 }
 0x13d   :  { %v2273_v2 = vadd.f32 %v2267_v32, %v598_v33  ;;  %v1540_v4 = vpop.f32.mrb[16].mxu0  ;;  %2983 = vst [vmem:[#allocation17_spill] sm:$0xff] %v2285_v27 }
 0x13e   :  { %v1541_v5 = vpop.f32.mrb[17].mxu0 }
 0x13f   :  { %v1542_v16 = vadd.f32 %v1541_v5, %v1540_v4  ;;  %v1543_v17 = vpop.f32.mrb[18].mxu0  ;;  %v633_v5 = vld [vmem:[%s2952_s1 + $0x50] sm:$0xff] }
 0x140   :  { %v1544_v19 = vpop.f32.mrb[19].mxu0 }
 0x141   :  { %v599_v20 = vmul.f32 0.9, %v1542_v16  ;;  %v1545_v25 = vadd.f32 %v1544_v19, %v1543_v17 }
 0x143   :  { %v600_v31 = vmul.f32 0.9, %v1545_v25  ;;  %v2288_v33 = vadd.f32 %v2283_v22, %v599_v20  ;;  %v2301_v25 = vmul.f32 0.1, %v633_v5  ;;  %v636_v5 = vld [vmem:[%s2952_s1 + $0x68] sm:$0xff] }
 0x144   :  { %v2321_v17 = vmul.f32 0.1, %v636_v5 }
 0x145   :  { %v2291_v23 = vadd.f32 %v2285_v27, %v600_v31  ;;  %v1546_v3 = vpop.f32.mrb[20].mxu0  ;;  %2984 = vst [vmem:[#allocation18_spill] sm:$0xff] %v2301_v25 }
 0x146   :  { %v1547_v4 = vpop.f32.mrb[21].mxu0  ;;  %2987 = vst [vmem:[#allocation21_spill] sm:$0xff] %v2321_v17 }
 0x147   :  { %v1548_v16 = vadd.f32 %v1547_v4, %v1546_v3  ;;  %v1549_v10 = vpop.f32.mrb[22].mxu0  ;;  %v635_v4 = vld [vmem:[%s2952_s1 + $0x60] sm:$0xff] }
 0x148   :  { %v1550_v19 = vpop.f32.mrb[23].mxu0 }
 0x149   :  { %v601_v20 = vmul.f32 0.9, %v1548_v16  ;;  %v1551_v31 = vadd.f32 %v1550_v19, %v1549_v10 }
 0x14b   :  { %v602_v21 = vmul.f32 0.9, %v1551_v31  ;;  %v2306_v27 = vadd.f32 %v2301_v25, %v601_v20  ;;  %v2319_v31 = vmul.f32 0.1, %v635_v4  ;;  %v638_v4 = vld [vmem:[%s2952_s1 + $0x78] sm:$0xff] }
 0x14c   :  { %v2339_v10 = vmul.f32 0.1, %v638_v4 }
 0x14d   :  { %v2309_v22 = vadd.f32 %v2303_v18, %v602_v21  ;;  %v1552_v32 = vpop.f32.mrb[24].mxu0  ;;  %2986 = vst [vmem:[#allocation20_spill] sm:$0xff] %v2319_v31 }
 0x14e   :  { %v1553_v3 = vpop.f32.mrb[25].mxu0  ;;  %2989 = vst [vmem:[#allocation23_spill] sm:$0xff] %v2339_v10 }
 0x14f   :  { %v1554_v16 = vadd.f32 %v1553_v3, %v1552_v32  ;;  %v1555_v7 = vpop.f32.mrb[26].mxu0  ;;  %v637_v3 = vld [vmem:[%s2952_s1 + $0x70] sm:$0xff] }
 0x150   :  { %v1556_v19 = vpop.f32.mrb[27].mxu0 }
 0x151   :  { %v603_v20 = vmul.f32 0.9, %v1554_v16  ;;  %v1557_v21 = vadd.f32 %v1556_v19, %v1555_v7 }
 0x153   :  { %v604_v18 = vmul.f32 0.9, %v1557_v21  ;;  %v2324_v25 = vadd.f32 %v2319_v31, %v603_v20  ;;  %v2337_v21 = vmul.f32 0.1, %v637_v3  ;;  %v640_v3 = vld [vmem:[%s2952_s1 + $0x88] sm:$0xff] }
 0x154   :  { %v2357_v7 = vmul.f32 0.1, %v640_v3 }
 0x155   :  { %v2327_v30 = vadd.f32 %v2321_v17, %v604_v18  ;;  %v1558_v8 = vpop.f32.mrb[28].mxu0  ;;  %2988 = vst [vmem:[#allocation22_spill] sm:$0xff] %v2337_v21 }
 0x156   :  { %v1559_v32 = vpop.f32.mrb[29].mxu0  ;;  %2991 = vst [vmem:[#allocation25_spill] sm:$0xff] %v2357_v7 }
 0x157   :  { %v1560_v16 = vadd.f32 %v1559_v32, %v1558_v8  ;;  %v1561_v5 = vpop.f32.mrb[30].mxu0  ;;  %v639_v32 = vld [vmem:[%s2952_s1 + $0x80] sm:$0xff] }
 0x158   :  { %v1562_v19 = vpop.f32.mrb[31].mxu0 }
 0x159   :  { %v605_v20 = vmul.f32 0.9, %v1560_v16  ;;  %v1563_v18 = vadd.f32 %v1562_v19, %v1561_v5 }
 0x15b   :  { %v606_v17 = vmul.f32 0.9, %v1563_v18  ;;  %v2342_v31 = vadd.f32 %v2337_v21, %v605_v20 }
 0x15d   :  { %v2345_v6 = vadd.f32 %v2339_v10, %v606_v17  ;;  %v1564_v26 = vpop.f32.mrb[32].mxu0  ;;  %v2355_v17 = vmul.f32 0.1, %v639_v32 }
 0x15e   :  { %v1565_v8 = vpop.f32.mrb[33].mxu0 }
 0x15f   :  { %v1566_v16 = vadd.f32 %v1565_v8, %v1564_v26  ;;  %v1567_v4 = vpop.f32.mrb[34].mxu0  ;;  %2990 = vst [vmem:[#allocation24_spill] sm:$0xff] %v2355_v17  ;;  %v641_v26 = vld [vmem:[%s2952_s1 + $0x90] sm:$0xff]  ;;  %v642_v8 = vld [vmem:[%s2952_s1 + $0x98] sm:$0xff] }
 0x160   :  { %v1568_v19 = vpop.f32.mrb[35].mxu0 }
 0x161   :  { %v607_v20 = vmul.f32 0.9, %v1566_v16  ;;  %v1569_v18 = vadd.f32 %v1568_v19, %v1567_v4 }
 0x163   :  { %v608_v10 = vmul.f32 0.9, %v1569_v18  ;;  %v703_v24 = vadd.f32 %v2355_v17, %v607_v20  ;;  %v2367_v18 = vmul.f32 0.1, %v641_v26  ;;  %v2369_v20 = vmul.f32 0.1, %v642_v8 }
 0x165   :  { %v1570_v21 = vpop.f32.mrb[36].mxu0  ;;  %v704_v11 = vadd.f32 %v2357_v7, %v608_v10  ;;  %v2992_v10 = vpack.c.bf16 %v2219_v14, %v2216_v13 }
 0x166   :  { %v1571_v9 = vpop.f32.mrb[37].mxu0 }
 0x167   :  { %v1572_v16 = vadd.f32 %v1571_v9, %v1570_v21  ;;  %v1573_v32 = vpop.f32.mrb[38].mxu0  ;;  %v727_v4 = vpack.c.bf16 %v704_v11, %v703_v24  ;;  %v643_v11 = vld [vmem:[%s2952_s1 + $0xa0] sm:$0xff]  ;;  %v644_v24 = vld [vmem:[%s2952_s1 + $0xa8] sm:$0xff] }
 0x168   :  { %v1574_v3 = vpop.f32.mrb[39].mxu0 }
 0x169   :  { %v609_v19 = vmul.f32 0.9, %v1572_v16  ;;  %v1575_v5 = vadd.f32 %v1574_v3, %v1573_v32  ;;  %1612 = vmatprep.subr.bf16.mxu1 %v727_v4  ;;  %v2384_v4 = vmul.f32 0.1, %v644_v24 }
 0x16a   :  { %1613 = vmatpush3.bf16.msra.mxu1 %v2992_v10 }
 0x16b   :  { %v610_v7 = vmul.f32 0.9, %v1575_v5  ;;  %v705_v17 = vadd.f32 %v2367_v18, %v609_v19  ;;  %v2382_v5 = vmul.f32 0.1, %v643_v11 }
 0x16d   :  { %v706_v0 = vadd.f32 %v2369_v20, %v610_v7  ;;  %v1576_v9 = vpop.f32.mrb[40].mxu0  ;;  %v2993_v7 = vpack.c.bf16 %v2237_v29, %v2234_v28 }
 0x16e   :  { %v1577_v21 = vpop.f32.mrb[41].mxu0 }
 0x16f   :  { %v1578_v26 = vadd.f32 %v1577_v21, %v1576_v9  ;;  %v1579_v8 = vpop.f32.mrb[42].mxu0  ;;  %v728_v16 = vpack.c.bf16 %v706_v0, %v705_v17  ;;  %v645_v0 = vld [vmem:[%s2952_s1 + $0xb0] sm:$0xff]  ;;  %v646_v17 = vld [vmem:[%s2952_s1 + $0xb8] sm:$0xff] }
 0x170   :  { %v1580_v13 = vpop.f32.mrb[43].mxu0 }
 0x171   :  { %v611_v14 = vmul.f32 0.9, %v1578_v26  ;;  %v1581_v32 = vadd.f32 %v1580_v13, %v1579_v8  ;;  %1614 = vmatprep.subr.bf16.mxu1 %v728_v16  ;;  %v2397_v8 = vmul.f32 0.1, %v645_v0  ;;  %v2399_v13 = vmul.f32 0.1, %v646_v17 }
 0x172   :  { %1615 = vmatpush3.bf16.msra.mxu1 %v2993_v7 }
 0x173   :  { %v612_v3 = vmul.f32 0.9, %v1581_v32  ;;  %v707_v19 = vadd.f32 %v2382_v5, %v611_v14  ;;  %v2994_v14 = vpack.c.bf16 %v2255_v15, %v2252_v12 }
 0x175   :  { %v708_v10 = vadd.f32 %v2384_v4, %v612_v3  ;;  %v1582_v9 = vpop.f32.mrb[44].mxu0 }
 0x176   :  { %v1583_v21 = vpop.f32.mrb[45].mxu0 }
 0x177   :  { %v1584_v11 = vadd.f32 %v1583_v21, %v1582_v9  ;;  %v1585_v24 = vpop.f32.mrb[46].mxu0  ;;  %v729_v26 = vpack.c.bf16 %v708_v10, %v707_v19  ;;  %v647_v19 = vld [vmem:[%s2952_s1 + $0xc0] sm:$0xff]  ;;  %v648_v10 = vld [vmem:[%s2952_s1 + $0xc8] sm:$0xff] }
 0x178   :  { %v1586_v28 = vpop.f32.mrb[47].mxu0 }
 0x179   :  { %v613_v29 = vmul.f32 0.9, %v1584_v11  ;;  %v1587_v16 = vadd.f32 %v1586_v28, %v1585_v24  ;;  %1616 = vmatprep.subr.bf16.mxu1 %v729_v26  ;;  %v2412_v24 = vmul.f32 0.1, %v647_v19  ;;  %v2414_v28 = vmul.f32 0.1, %v648_v10 }
 0x17a   :  { %1617 = vmatpush3.bf16.msra.mxu1 %v2994_v14 }
 0x17b   :  { %v614_v32 = vmul.f32 0.9, %v1587_v16  ;;  %v709_v7 = vadd.f32 %v2397_v8, %v613_v29  ;;  %v2995_v29 = vpack.c.bf16 %v2273_v2, %v2270_v1 }
 0x17d   :  { %v710_v3 = vadd.f32 %v2399_v13, %v614_v32  ;;  %v1588_v9 = vpop.f32.mrb[48].mxu0 }
 0x17e   :  { %v1589_v21 = vpop.f32.mrb[49].mxu0 }
 0x17f   :  { %v1590_v0 = vadd.f32 %v1589_v21, %v1588_v9  ;;  %v1591_v17 = vpop.f32.mrb[50].mxu0  ;;  %v730_v11 = vpack.c.bf16 %v710_v3, %v709_v7  ;;  %v649_v7 = vld [vmem:[%s2952_s1 + $0xd0] sm:$0xff]  ;;  %v650_v3 = vld [vmem:[%s2952_s1 + $0xd8] sm:$0xff] }
 0x180   :  { %v1592_v12 = vpop.f32.mrb[51].mxu0 }
 0x181   :  { %v615_v15 = vmul.f32 0.9, %v1590_v0  ;;  %v1593_v26 = vadd.f32 %v1592_v12, %v1591_v17  ;;  %1618 = vmatprep.subr.bf16.mxu1 %v730_v11  ;;  %v2427_v17 = vmul.f32 0.1, %v649_v7  ;;  %v2429_v12 = vmul.f32 0.1, %v650_v3 }
 0x182   :  { %1619 = vmatpush3.bf16.msra.mxu1 %v2995_v29 }
 0x183   :  { %v616_v16 = vmul.f32 0.9, %v1593_v26  ;;  %v711_v14 = vadd.f32 %v2412_v24, %v615_v15  ;;  %v2996_v15 = vpack.c.bf16 %v2291_v23, %v2288_v33 }
 0x185   :  { %v712_v32 = vadd.f32 %v2414_v28, %v616_v16  ;;  %v1594_v9 = vpop.f32.mrb[52].mxu0 }
 0x186   :  { %v1595_v21 = vpop.f32.mrb[53].mxu0 }
 0x187   :  { %v1596_v19 = vadd.f32 %v1595_v21, %v1594_v9  ;;  %v1597_v10 = vpop.f32.mrb[54].mxu0  ;;  %v731_v0 = vpack.c.bf16 %v712_v32, %v711_v14  ;;  %v651_v14 = vld [vmem:[%s2952_s1 + $0xe0] sm:$0xff]  ;;  %v652_v32 = vld [vmem:[%s2952_s1 + $0xe8] sm:$0xff] }
 0x188   :  { %v1598_v1 = vpop.f32.mrb[55].mxu0 }
 0x189   :  { %v617_v2 = vmul.f32 0.9, %v1596_v19  ;;  %v1599_v11 = vadd.f32 %v1598_v1, %v1597_v10  ;;  %1620 = vmatprep.subr.bf16.mxu1 %v731_v0  ;;  %v2442_v10 = vmul.f32 0.1, %v651_v14  ;;  %v2444_v1 = vmul.f32 0.1, %v652_v32 }
 0x18a   :  { %1621 = vmatpush3.bf16.msra.mxu1 %v2996_v15 }
 0x18b   :  { %v618_v26 = vmul.f32 0.9, %v1599_v11  ;;  %v713_v29 = vadd.f32 %v2427_v17, %v617_v2  ;;  %v2997_v2 = vpack.c.bf16 %v2309_v22, %v2306_v27 }
 0x18d   :  { %v714_v16 = vadd.f32 %v2429_v12, %v618_v26  ;;  %v1600_v9 = vpop.f32.mrb[56].mxu0 }
 0x18e   :  { %v1601_v21 = vpop.f32.mrb[57].mxu0 }
 0x18f   :  { %v1602_v7 = vadd.f32 %v1601_v21, %v1600_v9  ;;  %v1603_v3 = vpop.f32.mrb[58].mxu0  ;;  %v732_v19 = vpack.c.bf16 %v714_v16, %v713_v29  ;;  %v653_v29 = vld [vmem:[%s2952_s1 + $0xf0] sm:$0xff]  ;;  %v654_v16 = vld [vmem:[%s2952_s1 + $0xf8] sm:$0xff] }
 0x190   :  { %v1604_v23 = vpop.f32.mrb[59].mxu0 }
 0x191   :  { %v619_v33 = vmul.f32 0.9, %v1602_v7  ;;  %v1605_v0 = vadd.f32 %v1604_v23, %v1603_v3  ;;  %1622 = vmatprep.subr.bf16.mxu1 %v732_v19  ;;  %v2457_v3 = vmul.f32 0.1, %v653_v29  ;;  %v2459_v23 = vmul.f32 0.1, %v654_v16 }
 0x192   :  { %1623 = vmatpush3.bf16.msra.mxu1 %v2997_v2 }
 0x193   :  { %v620_v11 = vmul.f32 0.9, %v1605_v0  ;;  %v715_v15 = vadd.f32 %v2442_v10, %v619_v33  ;;  %v2998_v33 = vpack.c.bf16 %v2327_v30, %v2324_v25 }
 0x195   :  { %v716_v26 = vadd.f32 %v2444_v1, %v620_v11  ;;  %v1606_v9 = vpop.f32.mrb[60].mxu0 }
 0x196   :  { %v1607_v21 = vpop.f32.mrb[61].mxu0 }
 0x197   :  { %v1608_v14 = vadd.f32 %v1607_v21, %v1606_v9  ;;  %v1609_v32 = vpop.f32.mrb[62].mxu0  ;;  %v733_v7 = vpack.c.bf16 %v716_v26, %v715_v15  ;;  %v2999_v15 = vpack.c.bf16 %v2345_v6, %v2342_v31 }
 0x198   :  { %v1610_v22 = vpop.f32.mrb[63].mxu0 }
 0x199   :  { %v621_v27 = vmul.f32 0.9, %v1608_v14  ;;  %v1611_v19 = vadd.f32 %v1610_v22, %v1609_v32  ;;  %1624 = vmatprep.subr.bf16.mxu1 %v733_v7  ;;  %v3005_v32 = vld [vmem:[#allocation12_spill] sm:$0xff] }
 0x19a   :  { %1625 = vmatpush3.bf16.msra.mxu1 %v2998_v33 }
 0x19b   :  { %v622_v0 = vmul.f32 0.9, %v1611_v19  ;;  %v717_v2 = vadd.f32 %v2457_v3, %v621_v27  ;;  %v3006_v19 = vld [vmem:[#allocation13_spill] sm:$0xff] }
 0x19d   :  { %v718_v11 = vadd.f32 %v2459_v23, %v622_v0 }
 0x19f   :  { %v734_v9 = vpack.c.bf16 %v718_v11, %v717_v2 }
 0x1a1   :  { %1626 = vmatprep.subr.bf16.mxu1 %v734_v9 }
 0x1a2   :  { %1627 = vmatpush3.bf16.msra.mxu1 %v2999_v15 }
 0x1a5   :  { %832 = vmatmul.mubr.bf16.vlgmr.msra.gmra.mrb[0].mxu1 %v2112_v34  ;;  %v3000_v34 = vld [vmem:[#allocation7_spill] sm:$0xff] }
 0x1a6   :  { %839 = vmatprep.mubr.bf16.mxu1 %v2114_v35  ;;  %v1088_v35 = vlaneseq }
 0x1ad   :  { %840 = vmatmul.mubr.bf16.gmra.mrb[4].mxu1 %v2118_v36 }
 0x1ae   :  { %847 = vmatprep.mubr.bf16.mxu1 %v2120_v37 }
 0x1b5   :  { %848 = vmatmul.mubr.bf16.gmra.mrb[8].mxu1 %v2124_v38  ;;  %v2500_v38 = vand.u32 127, %v1088_v35 }
 0x1b6   :  { %855 = vmatprep.mubr.bf16.mxu1 %v2126_v39 }
 0x1b7   :  { %vm1090_vm0 = vcmp.lt.s32.totalorder %v2500_v38, 7 }
 0x1bd   :  { %856 = vmatmul.mubr.bf16.gmra.mrb[12].mxu1 %v2130_v40 }
 0x1be   :  { %863 = vmatprep.mubr.bf16.mxu1 %v2132_v41 }
 0x1c5   :  { %864 = vmatmul.mubr.bf16.gmra.mrb[16].mxu1 %v2136_v42 }
 0x1c6   :  { %871 = vmatprep.mubr.bf16.mxu1 %v2138_v43 }
 0x1cd   :  { %872 = vmatmul.mubr.bf16.gmra.mrb[20].mxu1 %v2142_v44 }
 0x1ce   :  { %879 = vmatprep.mubr.bf16.mxu1 %v2144_v45  ;;  %v3001_v45 = vld [vmem:[#allocation8_spill] sm:$0xff] }
 0x1d5   :  { %880 = vmatmul.mubr.bf16.gmra.mrb[24].mxu1 %v2148_v46 }
 0x1d6   :  { %887 = vmatprep.mubr.bf16.mxu1 %v2150_v47 }
 0x1dd   :  { %888 = vmatmul.mubr.bf16.gmra.mrb[28].mxu1 %v2154_v48 }
 0x1de   :  { %895 = vmatprep.mubr.bf16.mxu1 %v2156_v49  ;;  %v3002_v49 = vld [vmem:[#allocation9_spill] sm:$0xff] }
 0x1e5   :  { %896 = vmatmul.mubr.bf16.gmra.mrb[32].mxu1 %v2160_v50 }
 0x1e6   :  { %903 = vmatprep.mubr.bf16.mxu1 %v2162_v51 }
 0x1ed   :  { %904 = vmatmul.mubr.bf16.gmra.mrb[36].mxu1 %v2166_v52 }
 0x1ee   :  { %911 = vmatprep.mubr.bf16.mxu1 %v2168_v53 }
 0x1f5   :  { %912 = vmatmul.mubr.bf16.gmra.mrb[40].mxu1 %v2172_v54 }
 0x1f6   :  { %919 = vmatprep.mubr.bf16.mxu1 %v2174_v55 }
 0x1fd   :  { %920 = vmatmul.mubr.bf16.gmra.mrb[44].mxu1 %v2178_v56 }
 0x1fe   :  { %927 = vmatprep.mubr.bf16.mxu1 %v2180_v57 }
 0x205   :  { %928 = vmatmul.mubr.bf16.gmra.mrb[48].mxu1 %v2184_v58 }
 0x206   :  { %935 = vmatprep.mubr.bf16.mxu1 %v2186_v59  ;;  %v3003_v59 = vld [vmem:[#allocation10_spill] sm:$0xff] }
 0x20d   :  { %936 = vmatmul.mubr.bf16.gmra.mrb[52].mxu1 %v2190_v60 }
 0x20e   :  { %943 = vmatprep.mubr.bf16.mxu1 %v2192_v61 }
 0x215   :  { %944 = vmatmul.mubr.bf16.gmra.mrb[56].mxu1 %v2196_v62 }
 0x216   :  { %951 = vmatprep.mubr.bf16.mxu1 %v2198_v63  ;;  %v3004_v63 = vld [vmem:[#allocation11_spill] sm:$0xff] }
 0x21d   :  { %952 = vmatmul.mubr.bf16.gmra.mrb[60].mxu1 %v3000_v34 }
 0x278   :  { %v1628_v36 = vpop.f32.mrb[0].mxu1 }
 0x279   :  { %v1629_v37 = vpop.f32.mrb[1].mxu1 }
 0x27a   :  { %v1630_v39 = vadd.f32 %v1629_v37, %v1628_v36  ;;  %v1631_v40 = vpop.f32.mrb[2].mxu1  ;;  %v3007_v37 = vld [vmem:[#allocation14_spill] sm:$0xff] }
 0x27b   :  { %v1632_v41 = vpop.f32.mrb[3].mxu1 }
 0x27c   :  { %v960_v42 = vmul.f32 0.9, %v1630_v39  ;;  %v1633_v43 = vadd.f32 %v1632_v41, %v1631_v40 }
 0x27e   :  { %v961_v44 = vmul.f32 0.9, %v1633_v43  ;;  %v1056_v46 = vadd.f32 %v960_v42, %v3001_v45  ;;  %v3008_v42 = vld [vmem:[#allocation15_spill] sm:$0xff] }
 0x280   :  { %v1634_v47 = vpop.f32.mrb[4].mxu1  ;;  %v2506_v48 = vsel %vm1090_vm0, %v1056_v46, -inf  ;;  %v1057_v50 = vadd.f32 %v961_v44, %v3002_v49 }
 0x281   :  { %v1635_v51 = vpop.f32.mrb[5].mxu1  ;;  %1123 = vmax.xlane.f32.xlu0 %v2506_v48 }
 0x282   :  { %v1636_v52 = vadd.f32 %v1635_v51, %v1634_v47  ;;  %v1637_v53 = vpop.f32.mrb[6].mxu1  ;;  %v2512_v57 = vsel %vm1090_vm0, %v1057_v50, -inf }
 0x283   :  { %v1638_v54 = vpop.f32.mrb[7].mxu1 }
 0x284   :  { %v962_v55 = vmul.f32 0.9, %v1636_v52  ;;  %v1639_v56 = vadd.f32 %v1638_v54, %v1637_v53  ;;  %v3009_v53 = vld [vmem:[#allocation16_spill] sm:$0xff] }
 0x285   :  { %1125 = vmax.xlane.f32.xlu0 %v2512_v57 }
 0x286   :  { %v963_v58 = vmul.f32 0.9, %v1639_v56  ;;  %v1058_v60 = vadd.f32 %v962_v55, %v3003_v59 }
 0x288   :  { %v1640_v61 = vpop.f32.mrb[8].mxu1  ;;  %v2518_v62 = vsel %vm1090_vm0, %v1058_v60, -inf  ;;  %v1059_v6 = vadd.f32 %v963_v58, %v3004_v63  ;;  %v3010_v58 = vld [vmem:[#allocation17_spill] sm:$0xff] }
 0x289   :  { %v1641_v30 = vpop.f32.mrb[9].mxu1  ;;  %1127 = vmax.xlane.f32.xlu1 %v2518_v62 }
 0x28a   :  { %v1642_v25 = vadd.f32 %v1641_v30, %v1640_v61  ;;  %v1643_v31 = vpop.f32.mrb[10].mxu1  ;;  %v2524_v16 = vsel %vm1090_vm0, %v1059_v6, -inf }
 0x28b   :  { %v1644_v26 = vpop.f32.mrb[11].mxu1 }
 0x28c   :  { %v964_v21 = vmul.f32 0.9, %v1642_v25  ;;  %v1645_v29 = vadd.f32 %v1644_v26, %v1643_v31 }
 0x28d   :  { %1129 = vmax.xlane.f32.xlu1 %v2524_v16 }
 0x28e   :  { %v965_v14 = vmul.f32 0.9, %v1645_v29  ;;  %v1060_v7 = vadd.f32 %v964_v21, %v3005_v32  ;;  %v3011_v21 = vld [vmem:[#allocation18_spill] sm:$0xff] }
 0x290   :  { %v1646_v22 = vpop.f32.mrb[12].mxu1  ;;  %v2530_v27 = vsel %vm1090_vm0, %v1060_v7, -inf  ;;  %v1061_v33 = vadd.f32 %v965_v14, %v3006_v19  ;;  %v3012_v7 = vld [vmem:[#allocation19_spill] sm:$0xff] }
 0x291   :  { %v1647_v0 = vpop.f32.mrb[13].mxu1  ;;  %1131 = vmax.xlane.f32.xlu0 %v2530_v27 }
 0x292   :  { %v1648_v2 = vadd.f32 %v1647_v0, %v1646_v22  ;;  %v1649_v11 = vpop.f32.mrb[14].mxu1  ;;  %v2536_v9 = vsel %vm1090_vm0, %v1061_v33, -inf }
 0x293   :  { %v1650_v15 = vpop.f32.mrb[15].mxu1  ;;  %1133 = vmax.xlane.f32.xlu1 %v2536_v9 }
 0x294   :  { %v966_v34 = vmul.f32 0.9, %v1648_v2  ;;  %v1651_v35 = vadd.f32 %v1650_v15, %v1649_v11 }
 0x296   :  { %v967_v36 = vmul.f32 0.9, %v1651_v35  ;;  %v1062_v39 = vadd.f32 %v966_v34, %v3007_v37 }
 0x298   :  { %v1652_v40 = vpop.f32.mrb[16].mxu1  ;;  %v2542_v41 = vsel %vm1090_vm0, %v1062_v39, -inf  ;;  %v1063_v43 = vadd.f32 %v967_v36, %v3008_v42  ;;  %v3013_v36 = vld [vmem:[#allocation20_spill] sm:$0xff]  ;;  %v3014_v42 = vld [vmem:[#allocation21_spill] sm:$0xff] }
 0x299   :  { %v1653_v44 = vpop.f32.mrb[17].mxu1  ;;  %1135 = vmax.xlane.f32.xlu0 %v2542_v41 }
 0x29a   :  { %v1654_v45 = vadd.f32 %v1653_v44, %v1652_v40  ;;  %v1655_v46 = vpop.f32.mrb[18].mxu1  ;;  %v2548_v47 = vsel %vm1090_vm0, %v1063_v43, -inf }
 0x29b   :  { %v1656_v49 = vpop.f32.mrb[19].mxu1  ;;  %1137 = vmax.xlane.f32.xlu1 %v2548_v47 }
 0x29c   :  { %v968_v50 = vmul.f32 0.9, %v1654_v45  ;;  %v1657_v51 = vadd.f32 %v1656_v49, %v1655_v46 }
 0x29e   :  { %v969_v52 = vmul.f32 0.9, %v1657_v51  ;;  %v1064_v54 = vadd.f32 %v968_v50, %v3009_v53 }
 0x2a0   :  { %v1658_v55 = vpop.f32.mrb[20].mxu1  ;;  %v2554_v56 = vsel %vm1090_vm0, %v1064_v54, -inf  ;;  %v1065_v59 = vadd.f32 %v969_v52, %v3010_v58  ;;  %v3015_v54 = vld [vmem:[#allocation22_spill] sm:$0xff] }
 0x2a1   :  { %v1659_v60 = vpop.f32.mrb[21].mxu1  ;;  %1139 = vmax.xlane.f32.xlu0 %v2554_v56 }
 0x2a2   :  { %v1660_v61 = vadd.f32 %v1659_v60, %v1658_v55  ;;  %v1661_v63 = vpop.f32.mrb[22].mxu1  ;;  %v2560_v6 = vsel %vm1090_vm0, %v1065_v59, -inf  ;;  %v3016_v60 = vld [vmem:[#allocation23_spill] sm:$0xff] }
 0x2a3   :  { %v1662_v30 = vpop.f32.mrb[23].mxu1  ;;  %1141 = vmax.xlane.f32.xlu1 %v2560_v6 }
 0x2a4   :  { %v970_v25 = vmul.f32 0.9, %v1660_v61  ;;  %v1663_v31 = vadd.f32 %v1662_v30, %v1661_v63 }
 0x2a6   :  { %v971_v26 = vmul.f32 0.9, %v1663_v31  ;;  %v1066_v29 = vadd.f32 %v970_v25, %v3011_v21 }
 0x2a8   :  { %v1664_v14 = vpop.f32.mrb[24].mxu1  ;;  %v2566_v32 = vsel %vm1090_vm0, %v1066_v29, -inf  ;;  %v1067_v22 = vadd.f32 %v971_v26, %v3012_v7  ;;  %v3017_v7 = vld [vmem:[#allocation24_spill] sm:$0xff] }
 0x2a9   :  { %v1665_v19 = vpop.f32.mrb[25].mxu1  ;;  %1143 = vmax.xlane.f32.xlu0 %v2566_v32 }
 0x2aa   :  { %v1666_v33 = vadd.f32 %v1665_v19, %v1664_v14  ;;  %v1667_v0 = vpop.f32.mrb[26].mxu1  ;;  %v2572_v2 = vsel %vm1090_vm0, %v1067_v22, -inf }
 0x2ab   :  { %v1668_v11 = vpop.f32.mrb[27].mxu1  ;;  %1145 = vmax.xlane.f32.xlu1 %v2572_v2 }
 0x2ac   :  { %v972_v15 = vmul.f32 0.9, %v1666_v33  ;;  %v1669_v34 = vadd.f32 %v1668_v11, %v1667_v0  ;;  %v3018_v0 = vld [vmem:[#allocation25_spill] sm:$0xff] }
 0x2ae   :  { %v973_v35 = vmul.f32 0.9, %v1669_v34  ;;  %v1068_v37 = vadd.f32 %v972_v15, %v3013_v36 }
 0x2b0   :  { %v1670_v39 = vpop.f32.mrb[28].mxu1  ;;  %v2578_v40 = vsel %vm1090_vm0, %v1068_v37, -inf  ;;  %v1069_v43 = vadd.f32 %v973_v35, %v3014_v42 }
 0x2b1   :  { %v1671_v44 = vpop.f32.mrb[29].mxu1  ;;  %1147 = vmax.xlane.f32.xlu0 %v2578_v40 }
 0x2b2   :  { %v1672_v45 = vadd.f32 %v1671_v44, %v1670_v39  ;;  %v1673_v46 = vpop.f32.mrb[30].mxu1  ;;  %v2584_v49 = vsel %vm1090_vm0, %v1069_v43, -inf }
 0x2b3   :  { %v1674_v50 = vpop.f32.mrb[31].mxu1  ;;  %1149 = vmax.xlane.f32.xlu1 %v2584_v49 }
 0x2b4   :  { %v974_v51 = vmul.f32 0.9, %v1672_v45  ;;  %v1675_v52 = vadd.f32 %v1674_v50, %v1673_v46 }
 0x2b6   :  { %v975_v53 = vmul.f32 0.9, %v1675_v52  ;;  %v1070_v55 = vadd.f32 %v974_v51, %v3015_v54 }
 0x2b8   :  { %v1676_v58 = vpop.f32.mrb[32].mxu1  ;;  %v2590_v59 = vsel %vm1090_vm0, %v1070_v55, -inf  ;;  %v1071_v61 = vadd.f32 %v975_v53, %v3016_v60 }
 0x2b9   :  { %v1677_v63 = vpop.f32.mrb[33].mxu1  ;;  %1151 = vmax.xlane.f32.xlu0 %v2590_v59 }
 0x2ba   :  { %v1678_v30 = vadd.f32 %v1677_v63, %v1676_v58  ;;  %v1679_v25 = vpop.f32.mrb[34].mxu1  ;;  %v2596_v31 = vsel %vm1090_vm0, %v1071_v61, -inf }
 0x2bb   :  { %v1680_v26 = vpop.f32.mrb[35].mxu1  ;;  %1153 = vmax.xlane.f32.xlu1 %v2596_v31 }
 0x2bc   :  { %v976_v21 = vmul.f32 0.9, %v1678_v30  ;;  %v1681_v29 = vadd.f32 %v1680_v26, %v1679_v25 }
 0x2be   :  { %v977_v14 = vmul.f32 0.9, %v1681_v29  ;;  %v1072_v22 = vadd.f32 %v976_v21, %v3017_v7 }
 0x2c0   :  { %v1682_v19 = vpop.f32.mrb[36].mxu1  ;;  %v2602_v33 = vsel %vm1090_vm0, %v1072_v22, -inf  ;;  %v1073_v11 = vadd.f32 %v977_v14, %v3018_v0 }
 0x2c1   :  { %v1683_v15 = vpop.f32.mrb[37].mxu1  ;;  %1155 = vmax.xlane.f32.xlu0 %v2602_v33 }
 0x2c2   :  { %v1684_v34 = vadd.f32 %v1683_v15, %v1682_v19  ;;  %v1685_v35 = vpop.f32.mrb[38].mxu1  ;;  %v2608_v36 = vsel %vm1090_vm0, %v1073_v11, -inf }
 0x2c3   :  { %v1686_v37 = vpop.f32.mrb[39].mxu1  ;;  %1157 = vmax.xlane.f32.xlu1 %v2608_v36 }
 0x2c4   :  { %v978_v39 = vmul.f32 0.9, %v1684_v34  ;;  %v1687_v42 = vadd.f32 %v1686_v37, %v1685_v35 }
 0x2c6   :  { %v979_v43 = vmul.f32 0.9, %v1687_v42  ;;  %v1074_v44 = vadd.f32 %v978_v39, %v2367_v18 }
 0x2c8   :  { %v1688_v45 = vpop.f32.mrb[40].mxu1  ;;  %v2614_v46 = vsel %vm1090_vm0, %v1074_v44, -inf  ;;  %v1075_v50 = vadd.f32 %v979_v43, %v2369_v20 }
 0x2c9   :  { %v1689_v51 = vpop.f32.mrb[41].mxu1  ;;  %1159 = vmax.xlane.f32.xlu0 %v2614_v46 }
 0x2ca   :  { %v1690_v52 = vadd.f32 %v1689_v51, %v1688_v45  ;;  %v1691_v53 = vpop.f32.mrb[42].mxu1  ;;  %v2620_v54 = vsel %vm1090_vm0, %v1075_v50, -inf }
 0x2cb   :  { %v1692_v55 = vpop.f32.mrb[43].mxu1  ;;  %1161 = vmax.xlane.f32.xlu1 %v2620_v54 }
 0x2cc   :  { %v980_v18 = vmul.f32 0.9, %v1690_v52  ;;  %v1693_v58 = vadd.f32 %v1692_v55, %v1691_v53 }
 0x2ce   :  { %v981_v60 = vmul.f32 0.9, %v1693_v58  ;;  %v1076_v61 = vadd.f32 %v980_v18, %v2382_v5 }
 0x2d0   :  { %v1694_v63 = vpop.f32.mrb[44].mxu1  ;;  %v2626_v20 = vsel %vm1090_vm0, %v1076_v61, -inf  ;;  %v1077_v30 = vadd.f32 %v981_v60, %v2384_v4 }
 0x2d1   :  { %v1695_v25 = vpop.f32.mrb[45].mxu1  ;;  %1163 = vmax.xlane.f32.xlu0 %v2626_v20 }
 0x2d2   :  { %v1696_v26 = vadd.f32 %v1695_v25, %v1694_v63  ;;  %v1697_v21 = vpop.f32.mrb[46].mxu1  ;;  %v2632_v29 = vsel %vm1090_vm0, %v1077_v30, -inf }
 0x2d3   :  { %v1698_v14 = vpop.f32.mrb[47].mxu1  ;;  %1165 = vmax.xlane.f32.xlu1 %v2632_v29 }
 0x2d4   :  { %v982_v5 = vmul.f32 0.9, %v1696_v26  ;;  %v1699_v7 = vadd.f32 %v1698_v14, %v1697_v21 }
 0x2d6   :  { %v983_v22 = vmul.f32 0.9, %v1699_v7  ;;  %v1078_v19 = vadd.f32 %v982_v5, %v2397_v8 }
 0x2d8   :  { %v1700_v0 = vpop.f32.mrb[48].mxu1  ;;  %v2638_v4 = vsel %vm1090_vm0, %v1078_v19, -inf  ;;  %v1079_v11 = vadd.f32 %v983_v22, %v2399_v13 }
 0x2d9   :  { %v1701_v15 = vpop.f32.mrb[49].mxu1  ;;  %1167 = vmax.xlane.f32.xlu0 %v2638_v4 }
 0x2da   :  { %v1702_v34 = vadd.f32 %v1701_v15, %v1700_v0  ;;  %v1703_v35 = vpop.f32.mrb[50].mxu1  ;;  %v2644_v37 = vsel %vm1090_vm0, %v1079_v11, -inf }
 0x2db   :  { %v1704_v39 = vpop.f32.mrb[51].mxu1  ;;  %1169 = vmax.xlane.f32.xlu1 %v2644_v37 }
 0x2dc   :  { %v984_v8 = vmul.f32 0.9, %v1702_v34  ;;  %v1705_v42 = vadd.f32 %v1704_v39, %v1703_v35 }
 0x2de   :  { %v985_v43 = vmul.f32 0.9, %v1705_v42  ;;  %v1080_v44 = vadd.f32 %v984_v8, %v2412_v24 }
 0x2e0   :  { %v1706_v45 = vpop.f32.mrb[52].mxu1  ;;  %v2650_v13 = vsel %vm1090_vm0, %v1080_v44, -inf  ;;  %v1081_v50 = vadd.f32 %v985_v43, %v2414_v28 }
 0x2e1   :  { %v1707_v51 = vpop.f32.mrb[53].mxu1  ;;  %1171 = vmax.xlane.f32.xlu0 %v2650_v13 }
 0x2e2   :  { %v1708_v52 = vadd.f32 %v1707_v51, %v1706_v45  ;;  %v1709_v53 = vpop.f32.mrb[54].mxu1  ;;  %v2656_v55 = vsel %vm1090_vm0, %v1081_v50, -inf }
 0x2e3   :  { %v1710_v18 = vpop.f32.mrb[55].mxu1  ;;  %1173 = vmax.xlane.f32.xlu1 %v2656_v55 }
 0x2e4   :  { %v986_v24 = vmul.f32 0.9, %v1708_v52  ;;  %v1711_v58 = vadd.f32 %v1710_v18, %v1709_v53 }
 0x2e6   :  { %v987_v60 = vmul.f32 0.9, %v1711_v58  ;;  %v1082_v61 = vadd.f32 %v986_v24, %v2427_v17 }
 0x2e8   :  { %v1712_v63 = vpop.f32.mrb[56].mxu1  ;;  %v2662_v28 = vsel %vm1090_vm0, %v1082_v61, -inf  ;;  %v1083_v30 = vadd.f32 %v987_v60, %v2429_v12 }
 0x2e9   :  { %v1713_v25 = vpop.f32.mrb[57].mxu1  ;;  %1175 = vmax.xlane.f32.xlu0 %v2662_v28 }
 0x2ea   :  { %v1714_v26 = vadd.f32 %v1713_v25, %v1712_v63  ;;  %v1715_v21 = vpop.f32.mrb[58].mxu1  ;;  %v2668_v14 = vsel %vm1090_vm0, %v1083_v30, -inf }
 0x2eb   :  { %v1716_v5 = vpop.f32.mrb[59].mxu1  ;;  %1177 = vmax.xlane.f32.xlu1 %v2668_v14 }
 0x2ec   :  { %v988_v17 = vmul.f32 0.9, %v1714_v26  ;;  %v1717_v7 = vadd.f32 %v1716_v5, %v1715_v21 }
 0x2ee   :  { %v989_v22 = vmul.f32 0.9, %v1717_v7  ;;  %v1084_v19 = vadd.f32 %v988_v17, %v2442_v10 }
 0x2f0   :  { %v1718_v0 = vpop.f32.mrb[60].mxu1  ;;  %v2674_v12 = vsel %vm1090_vm0, %v1084_v19, -inf  ;;  %v1085_v11 = vadd.f32 %v989_v22, %v2444_v1 }
 0x2f1   :  { %v1719_v15 = vpop.f32.mrb[61].mxu1  ;;  %1179 = vmax.xlane.f32.xlu0 %v2674_v12 }
 0x2f2   :  { %v1720_v34 = vadd.f32 %v1719_v15, %v1718_v0  ;;  %v1721_v35 = vpop.f32.mrb[62].mxu1  ;;  %v2680_v39 = vsel %vm1090_vm0, %v1085_v11, -inf }
 0x2f3   :  { %v1722_v8 = vpop.f32.mrb[63].mxu1  ;;  %1181 = vmax.xlane.f32.xlu1 %v2680_v39 }
 0x2f4   :  { %v990_v10 = vmul.f32 0.9, %v1720_v34  ;;  %v1723_v42 = vadd.f32 %v1722_v8, %v1721_v35 }
 0x2f6   :  { %v991_v43 = vmul.f32 0.9, %v1723_v42  ;;  %v1086_v44 = vadd.f32 %v990_v10, %v2457_v3 }
 0x2f8   :  { %v2686_v1 = vsel %vm1090_vm0, %v1086_v44, -inf  ;;  %v1087_v45 = vadd.f32 %v991_v43, %v2459_v23 }
 0x2f9   :  { %1183 = vmax.xlane.f32.xlu0 %v2686_v1 }
 0x2fa   :  { %v2692_v50 = vsel %vm1090_vm0, %v1087_v45, -inf }
 0x2fb   :  { %1185 = vmax.xlane.f32.xlu1 %v2692_v50 }
 0x30e   :  { %v1124_v51 = vpop.xlane.xlu0 %1123 }
 0x30f   :  { %v2696_v52 = vsub.f32 %v2506_v48, %v1124_v51 }
 0x311   :  { %v1219_v3 = vmul.f32 1.442695, %v2696_v52 }
 0x312   :  { %v1126_v53 = vpop.xlane.xlu0 %1125 }
 0x313   :  { %1724 = vpow2.f32 %v1219_v3  ;;  %v2700_v18 = vsub.f32 %v2512_v57, %v1126_v53 }
 0x315   :  { %v1221_v23 = vmul.f32 1.442695, %v2700_v18 }
 0x316   :  { %v1128_v24 = vpop.xlane.xlu1 %1127 }
 0x317   :  { %1726 = vpow2.f32 %v1221_v23  ;;  %v2704_v38 = vsub.f32 %v2518_v62, %v1128_v24 }
 0x319   :  { %v1223_v58 = vmul.f32 1.442695, %v2704_v38 }
 0x31a   :  { %v1130_v60 = vpop.xlane.xlu1 %1129 }
 0x31b   :  { %1728 = vpow2.f32 %v1223_v58  ;;  %v2708_v48 = vsub.f32 %v2524_v16, %v1130_v60 }
 0x31d   :  { %v1725_v61 = vpop.eup %1724  ;;  %v1225_v63 = vmul.f32 1.442695, %v2708_v48 }
 0x31e   :  { %1283 = vadd.xlane.f32.xlu0 %v1725_v61  ;;  %v1132_v57 = vpop.xlane.xlu0 %1131 }
 0x31f   :  { %1730 = vpow2.f32 %v1225_v63  ;;  %v2712_v30 = vsub.f32 %v2530_v27, %v1132_v57 }
 0x320   :  { %v1134_v25 = vpop.xlane.xlu1 %1133 }
 0x321   :  { %v1727_v26 = vpop.eup %1726  ;;  %v1227_v62 = vmul.f32 1.442695, %v2712_v30  ;;  %v2716_v21 = vsub.f32 %v2536_v9, %v1134_v25 }
 0x322   :  { %1285 = vadd.xlane.f32.xlu1 %v1727_v26 }
 0x323   :  { %1732 = vpow2.f32 %v1227_v62  ;;  %v1229_v16 = vmul.f32 1.442695, %v2716_v21 }
 0x325   :  { %v1729_v5 = vpop.eup %1728  ;;  %1734 = vpow2.f32 %v1229_v16 }
 0x326   :  { %1287 = vadd.xlane.f32.xlu0 %v1729_v5  ;;  %v1136_v17 = vpop.xlane.xlu0 %1135 }
 0x327   :  { %v2720_v7 = vsub.f32 %v2542_v41, %v1136_v17 }
 0x328   :  { %v1138_v27 = vpop.xlane.xlu1 %1137 }
 0x329   :  { %v1731_v22 = vpop.eup %1730  ;;  %v1231_v19 = vmul.f32 1.442695, %v2720_v7  ;;  %v2724_v0 = vsub.f32 %v2548_v47, %v1138_v27 }
 0x32a   :  { %1289 = vadd.xlane.f32.xlu1 %v1731_v22 }
 0x32b   :  { %1736 = vpow2.f32 %v1231_v19  ;;  %v1233_v9 = vmul.f32 1.442695, %v2724_v0 }
 0x32d   :  { %v1733_v11 = vpop.eup %1732  ;;  %1738 = vpow2.f32 %v1233_v9 }
 0x32e   :  { %1291 = vadd.xlane.f32.xlu0 %v1733_v11  ;;  %v1140_v15 = vpop.xlane.xlu0 %1139 }
 0x32f   :  { %v1735_v34 = vpop.eup %1734  ;;  %v2728_v35 = vsub.f32 %v2554_v56, %v1140_v15 }
 0x330   :  { %v1142_v41 = vpop.xlane.xlu1 %1141  ;;  %1293 = vadd.xlane.f32.xlu1 %v1735_v34 }
 0x331   :  { %v1235_v8 = vmul.f32 1.442695, %v2728_v35  ;;  %v2732_v10 = vsub.f32 %v2560_v6, %v1142_v41 }
 0x333   :  { %1740 = vpow2.f32 %v1235_v8  ;;  %v1237_v47 = vmul.f32 1.442695, %v2732_v10 }
 0x335   :  { %v1737_v42 = vpop.eup %1736  ;;  %1742 = vpow2.f32 %v1237_v47 }
 0x336   :  { %1295 = vadd.xlane.f32.xlu0 %v1737_v42  ;;  %v1144_v43 = vpop.xlane.xlu0 %1143 }
 0x337   :  { %v1739_v44 = vpop.eup %1738  ;;  %v2736_v45 = vsub.f32 %v2566_v32, %v1144_v43 }
 0x338   :  { %v1146_v56 = vpop.xlane.xlu1 %1145  ;;  %1297 = vadd.xlane.f32.xlu1 %v1739_v44 }
 0x339   :  { %v1239_v51 = vmul.f32 1.442695, %v2736_v45  ;;  %v2740_v3 = vsub.f32 %v2572_v2, %v1146_v56 }
 0x33b   :  { %1744 = vpow2.f32 %v1239_v51  ;;  %v1241_v6 = vmul.f32 1.442695, %v2740_v3 }
 0x33d   :  { %v1741_v53 = vpop.eup %1740  ;;  %1746 = vpow2.f32 %v1241_v6 }
 0x33e   :  { %1299 = vadd.xlane.f32.xlu0 %v1741_v53  ;;  %v1148_v23 = vpop.xlane.xlu0 %1147 }
 0x33f   :  { %v1743_v24 = vpop.eup %1742  ;;  %v2744_v58 = vsub.f32 %v2578_v40, %v1148_v23 }
 0x340   :  { %v1150_v32 = vpop.xlane.xlu1 %1149  ;;  %1301 = vadd.xlane.f32.xlu1 %v1743_v24 }
 0x341   :  { %v1243_v60 = vmul.f32 1.442695, %v2744_v58  ;;  %v2748_v61 = vsub.f32 %v2584_v49, %v1150_v32 }
 0x343   :  { %1748 = vpow2.f32 %v1243_v60  ;;  %v1245_v2 = vmul.f32 1.442695, %v2748_v61 }
 0x345   :  { %v1745_v63 = vpop.eup %1744  ;;  %1750 = vpow2.f32 %v1245_v2 }
 0x346   :  { %1303 = vadd.xlane.f32.xlu0 %v1745_v63  ;;  %v1152_v57 = vpop.xlane.xlu0 %1151 }
 0x347   :  { %v1747_v25 = vpop.eup %1746  ;;  %v2752_v26 = vsub.f32 %v2590_v59, %v1152_v57 }
 0x348   :  { %v1154_v40 = vpop.xlane.xlu1 %1153  ;;  %1305 = vadd.xlane.f32.xlu1 %v1747_v25 }
 0x349   :  { %v1247_v62 = vmul.f32 1.442695, %v2752_v26  ;;  %v2756_v16 = vsub.f32 %v2596_v31, %v1154_v40 }
 0x34b   :  { %1752 = vpow2.f32 %v1247_v62  ;;  %v1249_v49 = vmul.f32 1.442695, %v2756_v16 }
 0x34d   :  { %v1749_v5 = vpop.eup %1748  ;;  %1754 = vpow2.f32 %v1249_v49 }
 0x34e   :  { %1307 = vadd.xlane.f32.xlu0 %v1749_v5  ;;  %v1156_v17 = vpop.xlane.xlu0 %1155 }
 0x34f   :  { %v1751_v27 = vpop.eup %1750  ;;  %v2760_v22 = vsub.f32 %v2602_v33, %v1156_v17 }
 0x350   :  { %v1158_v59 = vpop.xlane.xlu1 %1157  ;;  %1309 = vadd.xlane.f32.xlu1 %v1751_v27 }
 0x351   :  { %v1251_v19 = vmul.f32 1.442695, %v2760_v22  ;;  %v2764_v9 = vsub.f32 %v2608_v36, %v1158_v59 }
 0x353   :  { %1756 = vpow2.f32 %v1251_v19  ;;  %v1253_v31 = vmul.f32 1.442695, %v2764_v9 }
 0x355   :  { %v1753_v11 = vpop.eup %1752  ;;  %1758 = vpow2.f32 %v1253_v31 }
 0x356   :  { %1311 = vadd.xlane.f32.xlu0 %v1753_v11  ;;  %v1160_v15 = vpop.xlane.xlu0 %1159 }
 0x357   :  { %v1755_v34 = vpop.eup %1754  ;;  %v2768_v41 = vsub.f32 %v2614_v46, %v1160_v15 }
 0x358   :  { %v1162_v33 = vpop.xlane.xlu1 %1161  ;;  %1313 = vadd.xlane.f32.xlu1 %v1755_v34 }
 0x359   :  { %v1255_v8 = vmul.f32 1.442695, %v2768_v41  ;;  %v2772_v47 = vsub.f32 %v2620_v54, %v1162_v33 }
 0x35b   :  { %1760 = vpow2.f32 %v1255_v8  ;;  %v1257_v36 = vmul.f32 1.442695, %v2772_v47 }
 0x35d   :  { %v1757_v42 = vpop.eup %1756  ;;  %1762 = vpow2.f32 %v1257_v36 }
 0x35e   :  { %1315 = vadd.xlane.f32.xlu0 %v1757_v42  ;;  %v1164_v43 = vpop.xlane.xlu0 %1163 }
 0x35f   :  { %v1759_v44 = vpop.eup %1758  ;;  %v2776_v56 = vsub.f32 %v2626_v20, %v1164_v43 }
 0x360   :  { %v1166_v46 = vpop.xlane.xlu1 %1165  ;;  %1317 = vadd.xlane.f32.xlu1 %v1759_v44 }
 0x361   :  { %v1259_v51 = vmul.f32 1.442695, %v2776_v56  ;;  %v2780_v6 = vsub.f32 %v2632_v29, %v1166_v46 }
 0x363   :  { %1764 = vpow2.f32 %v1259_v51  ;;  %v1261_v54 = vmul.f32 1.442695, %v2780_v6 }
 0x365   :  { %v1761_v53 = vpop.eup %1760  ;;  %1766 = vpow2.f32 %v1261_v54 }
 0x366   :  { %1319 = vadd.xlane.f32.xlu0 %v1761_v53  ;;  %v1168_v23 = vpop.xlane.xlu0 %1167 }
 0x367   :  { %v1763_v24 = vpop.eup %1762  ;;  %v2784_v32 = vsub.f32 %v2638_v4, %v1168_v23 }
 0x368   :  { %v1170_v20 = vpop.xlane.xlu1 %1169  ;;  %1321 = vadd.xlane.f32.xlu1 %v1763_v24 }
 0x369   :  { %v1263_v60 = vmul.f32 1.442695, %v2784_v32  ;;  %v2788_v2 = vsub.f32 %v2644_v37, %v1170_v20 }
 0x36b   :  { %1768 = vpow2.f32 %v1263_v60  ;;  %v1265_v29 = vmul.f32 1.442695, %v2788_v2 }
 0x36d   :  { %v1765_v63 = vpop.eup %1764  ;;  %1770 = vpow2.f32 %v1265_v29 }
 0x36e   :  { %1323 = vadd.xlane.f32.xlu0 %v1765_v63  ;;  %v1172_v57 = vpop.xlane.xlu0 %1171 }
 0x36f   :  { %v1767_v25 = vpop.eup %1766  ;;  %v2792_v40 = vsub.f32 %v2650_v13, %v1172_v57 }
 0x370   :  { %v1174_v4 = vpop.xlane.xlu1 %1173  ;;  %1325 = vadd.xlane.f32.xlu1 %v1767_v25 }
 0x371   :  { %v1267_v62 = vmul.f32 1.442695, %v2792_v40  ;;  %v2796_v49 = vsub.f32 %v2656_v55, %v1174_v4 }
 0x373   :  { %1772 = vpow2.f32 %v1267_v62  ;;  %v1269_v37 = vmul.f32 1.442695, %v2796_v49 }
 0x375   :  { %v1769_v5 = vpop.eup %1768  ;;  %1774 = vpow2.f32 %v1269_v37 }
 0x376   :  { %1327 = vadd.xlane.f32.xlu0 %v1769_v5  ;;  %v1176_v17 = vpop.xlane.xlu0 %1175 }
 0x377   :  { %v1771_v27 = vpop.eup %1770  ;;  %v2800_v59 = vsub.f32 %v2662_v28, %v1176_v17 }
 0x378   :  { %v1178_v13 = vpop.xlane.xlu1 %1177  ;;  %1329 = vadd.xlane.f32.xlu1 %v1771_v27 }
 0x379   :  { %v1271_v19 = vmul.f32 1.442695, %v2800_v59  ;;  %v2804_v31 = vsub.f32 %v2668_v14, %v1178_v13 }
 0x37b   :  { %1776 = vpow2.f32 %v1271_v19  ;;  %v1273_v55 = vmul.f32 1.442695, %v2804_v31 }
 0x37d   :  { %v1773_v11 = vpop.eup %1772  ;;  %1778 = vpow2.f32 %v1273_v55 }
 0x37e   :  { %1331 = vadd.xlane.f32.xlu0 %v1773_v11  ;;  %v1180_v15 = vpop.xlane.xlu0 %1179 }
 0x37f   :  { %v1775_v34 = vpop.eup %1774  ;;  %v2808_v33 = vsub.f32 %v2674_v12, %v1180_v15 }
 0x380   :  { %v1182_v28 = vpop.xlane.xlu1 %1181  ;;  %1333 = vadd.xlane.f32.xlu1 %v1775_v34 }
 0x381   :  { %v1275_v8 = vmul.f32 1.442695, %v2808_v33  ;;  %v2812_v36 = vsub.f32 %v2680_v39, %v1182_v28 }
 0x383   :  { %1780 = vpow2.f32 %v1275_v8  ;;  %v1277_v14 = vmul.f32 1.442695, %v2812_v36 }
 0x385   :  { %v1777_v42 = vpop.eup %1776  ;;  %1782 = vpow2.f32 %v1277_v14 }
 0x386   :  { %1335 = vadd.xlane.f32.xlu0 %v1777_v42  ;;  %v1184_v43 = vpop.xlane.xlu0 %1183 }
 0x387   :  { %v1779_v44 = vpop.eup %1778  ;;  %v2816_v46 = vsub.f32 %v2686_v1, %v1184_v43 }
 0x388   :  { %v1186_v12 = vpop.xlane.xlu1 %1185  ;;  %1337 = vadd.xlane.f32.xlu1 %v1779_v44 }
 0x389   :  { %v1279_v51 = vmul.f32 1.442695, %v2816_v46  ;;  %v2820_v54 = vsub.f32 %v2692_v50, %v1186_v12 }
 0x38b   :  { %1784 = vpow2.f32 %v1279_v51  ;;  %v1281_v39 = vmul.f32 1.442695, %v2820_v54 }
 0x38d   :  { %v1781_v53 = vpop.eup %1780  ;;  %1786 = vpow2.f32 %v1281_v39 }
 0x38e   :  { %1339 = vadd.xlane.f32.xlu0 %v1781_v53 }
 0x38f   :  { %v1783_v23 = vpop.eup %1782 }
 0x390   :  { %1341 = vadd.xlane.f32.xlu1 %v1783_v23 }
 0x395   :  { %v1785_v24 = vpop.eup %1784 }
 0x396   :  { %1343 = vadd.xlane.f32.xlu0 %v1785_v24 }
 0x397   :  { %v1787_v20 = vpop.eup %1786 }
 0x398   :  { %1345 = vadd.xlane.f32.xlu1 %v1787_v20 }
 0x3ab   :  { %v1284_v1 = vpop.xlane.xlu0 %1283 }
 0x3ac   :  { %1788 = vlog2.f32 %v1284_v1 }
 0x3af   :  { %v1286_v60 = vpop.xlane.xlu1 %1285 }
 0x3b0   :  { %1790 = vlog2.f32 %v1286_v60 }
 0x3b3   :  { %v1288_v29 = vpop.xlane.xlu0 %1287 }
 0x3b4   :  { %1792 = vlog2.f32 %v1288_v29 }
 0x3b6   :  { %v1789_v50 = vpop.eup %1788 }
 0x3b7   :  { %v1348_v63 = vmul.f32 0.6931472, %v1789_v50  ;;  %v1290_v57 = vpop.xlane.xlu1 %1289 }
 0x3b8   :  { %1794 = vlog2.f32 %v1290_v57 }
 0x3b9   :  { %v1411_v25 = vsub.f32 %v2696_v52, %v1348_v63 }
 0x3ba   :  { %v1791_v4 = vpop.eup %1790 }
 0x3bb   :  { %1443 = vst [vmem:[%s2953_s2] sm:$0xff] %v1411_v25  ;;  %v1350_v62 = vmul.f32 0.6931472, %v1791_v4  ;;  %v1292_v37 = vpop.xlane.xlu0 %1291 }
 0x3bc   :  { %1796 = vlog2.f32 %v1292_v37 }
 0x3bd   :  { %v1412_v5 = vsub.f32 %v2700_v18, %v1350_v62  ;;  %v1294_v17 = vpop.xlane.xlu1 %1293 }
 0x3be   :  { %v1793_v27 = vpop.eup %1792  ;;  %1798 = vlog2.f32 %v1294_v17 }
 0x3bf   :  { %1444 = vst [vmem:[%s2953_s2 + $0x8] sm:$0xff] %v1412_v5  ;;  %v1352_v13 = vmul.f32 0.6931472, %v1793_v27 }
 0x3c1   :  { %v1413_v52 = vsub.f32 %v2704_v38, %v1352_v13 }
 0x3c2   :  { %v1795_v19 = vpop.eup %1794 }
 0x3c3   :  { %1445 = vst [vmem:[%s2953_s2 + $0x10] sm:$0xff] %v1413_v52  ;;  %v1354_v55 = vmul.f32 0.6931472, %v1795_v19  ;;  %v1296_v11 = vpop.xlane.xlu0 %1295 }
 0x3c4   :  { %1800 = vlog2.f32 %v1296_v11 }
 0x3c5   :  { %v1414_v18 = vsub.f32 %v2708_v48, %v1354_v55  ;;  %v1298_v15 = vpop.xlane.xlu1 %1297 }
 0x3c6   :  { %v1797_v34 = vpop.eup %1796  ;;  %1802 = vlog2.f32 %v1298_v15 }
 0x3c7   :  { %1446 = vst [vmem:[%s2953_s2 + $0x18] sm:$0xff] %v1414_v18  ;;  %v1356_v28 = vmul.f32 0.6931472, %v1797_v34 }
 0x3c8   :  { %v1799_v8 = vpop.eup %1798 }
 0x3c9   :  { %v1415_v38 = vsub.f32 %v2712_v30, %v1356_v28  ;;  %v1358_v14 = vmul.f32 0.6931472, %v1799_v8 }
 0x3cb   :  { %1447 = vst [vmem:[%s2953_s2 + $0x20] sm:$0xff] %v1415_v38  ;;  %v1416_v42 = vsub.f32 %v2716_v21, %v1358_v14  ;;  %v1300_v43 = vpop.xlane.xlu0 %1299 }
 0x3cc   :  { %1804 = vlog2.f32 %v1300_v43 }
 0x3cd   :  { %1448 = vst [vmem:[%s2953_s2 + $0x28] sm:$0xff] %v1416_v42  ;;  %v1302_v48 = vpop.xlane.xlu1 %1301 }
 0x3ce   :  { %v1801_v44 = vpop.eup %1800  ;;  %1806 = vlog2.f32 %v1302_v48 }
 0x3cf   :  { %v1360_v12 = vmul.f32 0.6931472, %v1801_v44 }
 0x3d0   :  { %v1803_v51 = vpop.eup %1802 }
 0x3d1   :  { %v1417_v30 = vsub.f32 %v2720_v7, %v1360_v12  ;;  %v1362_v39 = vmul.f32 0.6931472, %v1803_v51 }
 0x3d3   :  { %1449 = vst [vmem:[%s2953_s2 + $0x30] sm:$0xff] %v1417_v30  ;;  %v1418_v21 = vsub.f32 %v2724_v0, %v1362_v39  ;;  %v1304_v53 = vpop.xlane.xlu0 %1303 }
 0x3d4   :  { %1808 = vlog2.f32 %v1304_v53 }
 0x3d5   :  { %1450 = vst [vmem:[%s2953_s2 + $0x38] sm:$0xff] %v1418_v21  ;;  %v1306_v23 = vpop.xlane.xlu1 %1305 }
 0x3d6   :  { %v1805_v24 = vpop.eup %1804  ;;  %1810 = vlog2.f32 %v1306_v23 }
 0x3d7   :  { %v1364_v20 = vmul.f32 0.6931472, %v1805_v24 }
 0x3d8   :  { %v1807_v1 = vpop.eup %1806 }
 0x3d9   :  { %v1419_v7 = vsub.f32 %v2728_v35, %v1364_v20  ;;  %v1366_v60 = vmul.f32 0.6931472, %v1807_v1 }
 0x3db   :  { %1451 = vst [vmem:[%s2953_s2 + $0x40] sm:$0xff] %v1419_v7  ;;  %v1420_v0 = vsub.f32 %v2732_v10, %v1366_v60  ;;  %v1308_v29 = vpop.xlane.xlu0 %1307 }
 0x3dc   :  { %1812 = vlog2.f32 %v1308_v29 }
 0x3dd   :  { %1452 = vst [vmem:[%s2953_s2 + $0x48] sm:$0xff] %v1420_v0  ;;  %v1310_v50 = vpop.xlane.xlu1 %1309 }
 0x3de   :  { %v1809_v63 = vpop.eup %1808  ;;  %1814 = vlog2.f32 %v1310_v50 }
 0x3df   :  { %v1368_v57 = vmul.f32 0.6931472, %v1809_v63 }
 0x3e0   :  { %v1811_v25 = vpop.eup %1810 }
 0x3e1   :  { %v1421_v35 = vsub.f32 %v2736_v45, %v1368_v57  ;;  %v1370_v4 = vmul.f32 0.6931472, %v1811_v25 }
 0x3e3   :  { %1453 = vst [vmem:[%s2953_s2 + $0x50] sm:$0xff] %v1421_v35  ;;  %v1422_v10 = vsub.f32 %v2740_v3, %v1370_v4  ;;  %v1312_v62 = vpop.xlane.xlu0 %1311 }
 0x3e4   :  { %1816 = vlog2.f32 %v1312_v62 }
 0x3e5   :  { %1454 = vst [vmem:[%s2953_s2 + $0x58] sm:$0xff] %v1422_v10  ;;  %v1314_v37 = vpop.xlane.xlu1 %1313 }
 0x3e6   :  { %v1813_v5 = vpop.eup %1812  ;;  %1818 = vlog2.f32 %v1314_v37 }
 0x3e7   :  { %v1372_v17 = vmul.f32 0.6931472, %v1813_v5 }
 0x3e8   :  { %v1815_v27 = vpop.eup %1814 }
 0x3e9   :  { %v1423_v45 = vsub.f32 %v2744_v58, %v1372_v17  ;;  %v1374_v13 = vmul.f32 0.6931472, %v1815_v27 }
 0x3eb   :  { %1455 = vst [vmem:[%s2953_s2 + $0x60] sm:$0xff] %v1423_v45  ;;  %v1424_v3 = vsub.f32 %v2748_v61, %v1374_v13  ;;  %v1316_v52 = vpop.xlane.xlu0 %1315 }
 0x3ec   :  { %1820 = vlog2.f32 %v1316_v52 }
 0x3ed   :  { %1456 = vst [vmem:[%s2953_s2 + $0x68] sm:$0xff] %v1424_v3  ;;  %v1318_v19 = vpop.xlane.xlu1 %1317 }
 0x3ee   :  { %v1817_v55 = vpop.eup %1816  ;;  %1822 = vlog2.f32 %v1318_v19 }
 0x3ef   :  { %v1376_v11 = vmul.f32 0.6931472, %v1817_v55 }
 0x3f0   :  { %v1819_v18 = vpop.eup %1818 }
 0x3f1   :  { %v1425_v58 = vsub.f32 %v2752_v26, %v1376_v11  ;;  %v1378_v15 = vmul.f32 0.6931472, %v1819_v18 }
 0x3f3   :  { %1457 = vst [vmem:[%s2953_s2 + $0x70] sm:$0xff] %v1425_v58  ;;  %v1426_v61 = vsub.f32 %v2756_v16, %v1378_v15  ;;  %v1320_v34 = vpop.xlane.xlu0 %1319 }
 0x3f4   :  { %1824 = vlog2.f32 %v1320_v34 }
 0x3f5   :  { %1458 = vst [vmem:[%s2953_s2 + $0x78] sm:$0xff] %v1426_v61  ;;  %v1322_v28 = vpop.xlane.xlu1 %1321 }
 0x3f6   :  { %v1821_v8 = vpop.eup %1820  ;;  %1826 = vlog2.f32 %v1322_v28 }
 0x3f7   :  { %v1380_v38 = vmul.f32 0.6931472, %v1821_v8 }
 0x3f8   :  { %v1823_v14 = vpop.eup %1822 }
 0x3f9   :  { %v1427_v26 = vsub.f32 %v2760_v22, %v1380_v38  ;;  %v1382_v42 = vmul.f32 0.6931472, %v1823_v14 }
 0x3fb   :  { %1459 = vst [vmem:[%s2953_s2 + $0x80] sm:$0xff] %v1427_v26  ;;  %v1428_v16 = vsub.f32 %v2764_v9, %v1382_v42  ;;  %v1324_v43 = vpop.xlane.xlu0 %1323 }
 0x3fc   :  { %1828 = vlog2.f32 %v1324_v43 }
 0x3fd   :  { %1460 = vst [vmem:[%s2953_s2 + $0x88] sm:$0xff] %v1428_v16  ;;  %v1326_v48 = vpop.xlane.xlu1 %1325 }
 0x3fe   :  { %v1825_v44 = vpop.eup %1824  ;;  %1830 = vlog2.f32 %v1326_v48 }
 0x3ff   :  { %v1384_v12 = vmul.f32 0.6931472, %v1825_v44 }
 0x400   :  { %v1827_v51 = vpop.eup %1826 }
 0x401   :  { %v1429_v22 = vsub.f32 %v2768_v41, %v1384_v12  ;;  %v1386_v30 = vmul.f32 0.6931472, %v1827_v51 }
 0x403   :  { %1461 = vst [vmem:[%s2953_s2 + $0x90] sm:$0xff] %v1429_v22  ;;  %v1430_v9 = vsub.f32 %v2772_v47, %v1386_v30  ;;  %v1328_v39 = vpop.xlane.xlu0 %1327 }
 0x404   :  { %1832 = vlog2.f32 %v1328_v39 }
 0x405   :  { %1462 = vst [vmem:[%s2953_s2 + $0x98] sm:$0xff] %v1430_v9  ;;  %v1330_v21 = vpop.xlane.xlu1 %1329 }
 0x406   :  { %v1829_v53 = vpop.eup %1828  ;;  %1834 = vlog2.f32 %v1330_v21 }
 0x407   :  { %v1388_v23 = vmul.f32 0.6931472, %v1829_v53 }
 0x408   :  { %v1831_v24 = vpop.eup %1830 }
 0x409   :  { %v1431_v41 = vsub.f32 %v2776_v56, %v1388_v23  ;;  %v1390_v20 = vmul.f32 0.6931472, %v1831_v24 }
 0x40b   :  { %1463 = vst [vmem:[%s2953_s2 + $0xa0] sm:$0xff] %v1431_v41  ;;  %v1432_v47 = vsub.f32 %v2780_v6, %v1390_v20  ;;  %v1332_v1 = vpop.xlane.xlu0 %1331 }
 0x40c   :  { %1836 = vlog2.f32 %v1332_v1 }
 0x40d   :  { %1464 = vst [vmem:[%s2953_s2 + $0xa8] sm:$0xff] %v1432_v47  ;;  %v1334_v7 = vpop.xlane.xlu1 %1333 }
 0x40e   :  { %v1833_v60 = vpop.eup %1832  ;;  %1838 = vlog2.f32 %v1334_v7 }
 0x40f   :  { %v1392_v0 = vmul.f32 0.6931472, %v1833_v60 }
 0x410   :  { %v1835_v29 = vpop.eup %1834 }
 0x411   :  { %v1433_v56 = vsub.f32 %v2784_v32, %v1392_v0  ;;  %v1394_v50 = vmul.f32 0.6931472, %v1835_v29 }
 0x413   :  { %1465 = vst [vmem:[%s2953_s2 + $0xb0] sm:$0xff] %v1433_v56  ;;  %v1434_v6 = vsub.f32 %v2788_v2, %v1394_v50  ;;  %v1336_v63 = vpop.xlane.xlu0 %1335 }
 0x414   :  { %1840 = vlog2.f32 %v1336_v63 }
 0x415   :  { %1466 = vst [vmem:[%s2953_s2 + $0xb8] sm:$0xff] %v1434_v6  ;;  %v1338_v57 = vpop.xlane.xlu1 %1337 }
 0x416   :  { %v1837_v25 = vpop.eup %1836  ;;  %1842 = vlog2.f32 %v1338_v57 }
 0x417   :  { %v1396_v35 = vmul.f32 0.6931472, %v1837_v25 }
 0x418   :  { %v1839_v4 = vpop.eup %1838 }
 0x419   :  { %v1435_v32 = vsub.f32 %v2792_v40, %v1396_v35  ;;  %v1398_v10 = vmul.f32 0.6931472, %v1839_v4 }
 0x41b   :  { %1467 = vst [vmem:[%s2953_s2 + $0xc0] sm:$0xff] %v1435_v32  ;;  %v1436_v2 = vsub.f32 %v2796_v49, %v1398_v10  ;;  %v1340_v62 = vpop.xlane.xlu0 %1339 }
 0x41c   :  { %1844 = vlog2.f32 %v1340_v62 }
 0x41d   :  { %1468 = vst [vmem:[%s2953_s2 + $0xc8] sm:$0xff] %v1436_v2  ;;  %v1342_v37 = vpop.xlane.xlu1 %1341 }
 0x41e   :  { %v1841_v5 = vpop.eup %1840  ;;  %1846 = vlog2.f32 %v1342_v37 }
 0x41f   :  { %v1400_v17 = vmul.f32 0.6931472, %v1841_v5 }
 0x420   :  { %v1843_v27 = vpop.eup %1842 }
 0x421   :  { %v1437_v40 = vsub.f32 %v2800_v59, %v1400_v17  ;;  %v1402_v45 = vmul.f32 0.6931472, %v1843_v27 }
 0x423   :  { %1469 = vst [vmem:[%s2953_s2 + $0xd0] sm:$0xff] %v1437_v40  ;;  %v1438_v49 = vsub.f32 %v2804_v31, %v1402_v45  ;;  %v1344_v13 = vpop.xlane.xlu0 %1343 }
 0x424   :  { %1848 = vlog2.f32 %v1344_v13 }
 0x425   :  { %1470 = vst [vmem:[%s2953_s2 + $0xd8] sm:$0xff] %v1438_v49  ;;  %v1346_v3 = vpop.xlane.xlu1 %1345 }
 0x426   :  { %v1845_v52 = vpop.eup %1844  ;;  %1850 = vlog2.f32 %v1346_v3 }
 0x427   :  { %v1404_v19 = vmul.f32 0.6931472, %v1845_v52 }
 0x428   :  { %v1847_v55 = vpop.eup %1846 }
 0x429   :  { %v1439_v59 = vsub.f32 %v2808_v33, %v1404_v19  ;;  %v1406_v11 = vmul.f32 0.6931472, %v1847_v55 }
 0x42b   :  { %1471 = vst [vmem:[%s2953_s2 + $0xe0] sm:$0xff] %v1439_v59  ;;  %v1440_v31 = vsub.f32 %v2812_v36, %v1406_v11 }
 0x42d   :  { %1472 = vst [vmem:[%s2953_s2 + $0xe8] sm:$0xff] %v1440_v31 }
 0x42e   :  { %v1849_v18 = vpop.eup %1848 }
 0x42f   :  { %v1408_v58 = vmul.f32 0.6931472, %v1849_v18 }
 0x430   :  { %v1851_v15 = vpop.eup %1850 }
 0x431   :  { %v1441_v61 = vsub.f32 %v2816_v46, %v1408_v58  ;;  %v1410_v34 = vmul.f32 0.6931472, %v1851_v15 }
 0x433   :  { %1473 = vst [vmem:[%s2953_s2 + $0xf0] sm:$0xff] %v1441_v61  ;;  %v1442_v33 = vsub.f32 %v2820_v54, %v1410_v34 }
 0x435   :  { %1474 = vst [vmem:[%s2953_s2 + $0xf8] sm:$0xff] %v1442_v33 }
 0x436   :  { %1479 = vsyncmov [#allocation4] }
 0x439   :  { %s1480_s9 = vpop.sfrf %1479 }
 0x43a   :  { %p1499_p0 = scmp.ne.s32.totalorder %s1480_s9, 0 }
 0x43c   :  { %1484 = shalt.err (%p1499_p0)  }

</bundles_post_ra>
